<compile_context>
chip_gen: v5e
topology: v5e:2x2
jax: 0.10.0
libtpu: 0.0.40
codegen_flags: <defaults>
</compile_context>

<pallas_src>
import math
import functools

import jax
import jax.numpy as jnp
from jax.experimental import pallas as pl
from jax.experimental.pallas import tpu as pltpu


# ----------------------------------------------------------------------------
# Small in-kernel helpers
# ----------------------------------------------------------------------------
def _layer_norm(x, w, b, eps=1e-5):
    mu = jnp.mean(x, axis=-1, keepdims=True)
    xc = x - mu
    var = jnp.mean(xc * xc, axis=-1, keepdims=True)
    return xc * jax.lax.rsqrt(var + eps) * w + b


def _gelu_exact(x):
    # torch F.gelu default (exact erf form)
    return 0.5 * x * (1.0 + jax.lax.erf(x * (1.0 / math.sqrt(2.0))))


# ----------------------------------------------------------------------------
# Kernel: one grid step = (one batch element, one encoder layer)
# ----------------------------------------------------------------------------
def _mld_layer_kernel(
        t_sin_ref, sample_ref, text_ref, pe_ref,
        tw1_ref, tb1_ref, tw2_ref, tb2_ref,          # TimestepEmbedding MLP
        pw_ref, pb_ref,                              # emb_proj (ReLU -> Linear)
        wq_ref, bq_ref, wk_ref, bk_ref, wv_ref, bv_ref,   # per-head QKV (streamed)
        wo_ref, bo_ref,                              # out proj (streamed)
        ln1w_ref, ln1b_ref,                          # norm1 (streamed)
        fw1_ref, fb1_ref, fw2_ref, fb2_ref,          # FFN (streamed)
        ln2w_ref, ln2b_ref,                          # norm2 (streamed)
        o_ref,                                       # output block (N, D)
        x_sc,                                        # persistent (S, D) VMEM carry
        *, approx_recip):
    l = pl.program_id(1)
    n_latent, d = sample_ref.shape
    n_text = text_ref.shape[0]
    seq = n_latent + 1 + n_text
    n_heads = wq_ref.shape[0]

    f32 = jnp.float32
    bf16 = jnp.bfloat16

    # ---- prologue (only at layer 0): xseq = [sample ; time_tok ; text] + PE --
    @pl.when(l == 0)
    def _prologue():
        # diffusers TimestepEmbedding: Linear -> SiLU -> Linear
        ts = t_sin_ref[...].astype(bf16)                                   # (1, C)
        h = jnp.dot(ts, tw1_ref[...], preferred_element_type=f32) + tb1_ref[...]
        h = h * jax.nn.sigmoid(h)                                          # SiLU
        time_emb = (jnp.dot(h.astype(bf16), tw2_ref[...],
                            preferred_element_type=f32) + tb2_ref[...])    # (1, D)
        # emb_proj: ReLU -> Linear(text_encoded_dim -> latent_dim)
        txt = jnp.maximum(text_ref[...], 0.0).astype(bf16)                 # (T, C)
        txt_lat = (jnp.dot(txt, pw_ref[...],
                           preferred_element_type=f32) + pb_ref[...])      # (T, D)
        x0 = jnp.concatenate([sample_ref[...], time_emb, txt_lat], axis=0)
        x_sc[...] = x0 + pe_ref[...]                 # ACTOR sinusoidal PE (eval)

    # ---- one post-norm nn.TransformerEncoderLayer ---------------------------
    x = x_sc[...]                                                          # (S, D) f32
    xb = x.astype(bf16)

    attn = jnp.zeros((seq, d), f32)
    for hh in range(n_heads):        # static loop; all head slices are leading-dim
        q = jnp.dot(xb, wq_ref[hh], preferred_element_type=f32) + bq_ref[hh]  # (S, Dh)
        k = jnp.dot(xb, wk_ref[hh], preferred_element_type=f32) + bk_ref[hh]
        v = jnp.dot(xb, wv_ref[hh], preferred_element_type=f32) + bv_ref[hh]
        # scores = q @ k.T ; 1/sqrt(Dh) already folded into wq/bq at init
        s = jax.lax.dot_general(q.astype(bf16), k.astype(bf16),
                                (((1,), (1,)), ((), ())),
                                preferred_element_type=f32)                # (S, S)
        s = s - jnp.max(s, axis=-1, keepdims=True)
        p = jnp.exp(s)
        denom = jnp.sum(p, axis=-1, keepdims=True)
        if approx_recip:
            p = p * pl.reciprocal(denom, approx=True)   # EUP slot; eval-grade
        else:
            p = p / denom                               # exact parity path
        ctx = jnp.dot(p.astype(bf16), v.astype(bf16),
                      preferred_element_type=f32)                          # (S, Dh)
        # heads recombine through the per-head slice of the output projection
        attn = attn + jnp.dot(ctx.astype(bf16), wo_ref[hh],
                              preferred_element_type=f32)
    attn = attn + bo_ref[...]

    h1 = _layer_norm(x + attn, ln1w_ref[...], ln1b_ref[...])

    ff = jnp.dot(h1.astype(bf16), fw1_ref[...],
                 preferred_element_type=f32) + fb1_ref[...]
    ff = _gelu_exact(ff)
    ff = jnp.dot(ff.astype(bf16), fw2_ref[...],
                 preferred_element_type=f32) + fb2_ref[...]

    y = _layer_norm(h1 + ff, ln2w_ref[...], ln2b_ref[...])
    x_sc[...] = y                                   # carry to next layer step

    # ---- epilogue: sample = tokens[:n_latent] --------------------------------
    @pl.when(l == pl.num_programs(1) - 1)
    def _epilogue():
        o_ref[...] = y[0:n_latent, :]


# ----------------------------------------------------------------------------
# Glue: sinusoidal tables (Timesteps / PositionalEncoding) and parameters
# ----------------------------------------------------------------------------
def get_timestep_embedding(timesteps, dim, flip_sin_to_cos=True,
                           downscale_freq_shift=0.0, max_period=10000.0):
    # diffusers.Timesteps / get_timestep_embedding (freq_shift=0 per module)
    if dim % 2 != 0:
        # TODO(synk): diffusers zero-pads the last channel for odd embedding dims.
        raise NotImplementedError("odd timestep-embedding dim not supported")
    half = dim // 2
    exponent = -math.log(max_period) * jnp.arange(half, dtype=jnp.float32)
    exponent = exponent / (half - downscale_freq_shift)
    freqs = jnp.exp(exponent)
    emb = timesteps.astype(jnp.float32)[:, None] * freqs[None, :]
    sin, cos = jnp.sin(emb), jnp.cos(emb)
    if flip_sin_to_cos:
        return jnp.concatenate([cos, sin], axis=-1)
    return jnp.concatenate([sin, cos], axis=-1)


def sinusoidal_pe(max_len, d_model):
    # ACTOR PositionalEncoding table (dropout inactive in eval)
    position = jnp.arange(max_len, dtype=jnp.float32)[:, None]
    div_term = jnp.exp(jnp.arange(0, d_model, 2, dtype=jnp.float32) *
                       (-math.log(10000.0) / d_model))
    pe = jnp.zeros((max_len, d_model), jnp.float32)
    pe = pe.at[:, 0::2].set(jnp.sin(position * div_term))
    pe = pe.at[:, 1::2].set(jnp.cos(position * div_term))
    return pe


def init_params(key, latent_dim, text_encoded_dim, ff_size, num_layers,
                num_heads, max_len=64):
    D, C, F, H = latent_dim, text_encoded_dim, ff_size, num_heads
    Dh = D // H
    assert H * Dh == D, "latent_dim must be divisible by num_heads"
    scale = 1.0 / math.sqrt(Dh)
    keys = iter(jax.random.split(key, 16 * num_layers + 16))

    def w(shape, s=0.05):
        return s * jax.random.normal(next(keys), shape, jnp.float32)

    def bias(shape, s=0.01):
        return s * jax.random.normal(next(keys), shape, jnp.float32)

    def heads_out(wmat, bvec):
        # (D, D), (1, D)  ->  (H, D, Dh), (H, 1, Dh)   (head-major stacking)
        return (wmat.reshape(D, H, Dh).transpose(1, 0, 2),
                bvec.reshape(1, H, Dh).transpose(1, 0, 2))

    wq, bq, wk, bk, wv, bv, wo, bo = ([] for _ in range(8))
    ln1w, ln1b, fw1, fb1, fw2, fb2, ln2w, ln2b = ([] for _ in range(8))
    for _ in range(num_layers):
        # fold attention scale 1/sqrt(Dh) into the query projection
        wq_l, bq_l = heads_out(w((D, D)) * scale, bias((1, D)) * scale)
        wk_l, bk_l = heads_out(w((D, D)), bias((1, D)))
        wv_l, bv_l = heads_out(w((D, D)), bias((1, D)))
        wq.append(wq_l); bq.append(bq_l)
        wk.append(wk_l); bk.append(bk_l)
        wv.append(wv_l); bv.append(bv_l)
        wo.append(w((D, D)).reshape(H, Dh, D))       # rows grouped per head
        bo.append(bias((1, D)))
        ln1w.append(jnp.ones((1, D), jnp.float32))
        ln1b.append(jnp.zeros((1, D), jnp.float32))
        fw1.append(w((D, F))); fb1.append(bias((1, F)))
        fw2.append(w((F, D))); fb2.append(bias((1, D)))
        ln2w.append(jnp.ones((1, D), jnp.float32))
        ln2b.append(jnp.zeros((1, D), jnp.float32))

    bf16 = jnp.bfloat16
    stack = lambda xs, dt=jnp.float32: jnp.stack(xs).astype(dt)
    return {
        # TimestepEmbedding(text_encoded_dim -> latent_dim): Linear, SiLU, Linear
        'time_w1': w((C, D)).astype(bf16), 'time_b1': bias((1, D)),
        'time_w2': w((D, D)).astype(bf16), 'time_b2': bias((1, D)),
        # emb_proj: ReLU -> Linear(text_encoded_dim, latent_dim)
        'proj_w': w((C, D)).astype(bf16), 'proj_b': bias((1, D)),
        # query_pos (ACTOR sinusoidal PE)
        'pe': sinusoidal_pe(max_len, D),
        # encoder layers stacked along a leading L axis (streamed over the grid)
        'wq': stack(wq, bf16), 'bq': stack(bq),
        'wk': stack(wk, bf16), 'bk': stack(bk),
        'wv': stack(wv, bf16), 'bv': stack(bv),
        'wo': stack(wo, bf16), 'bo': stack(bo),
        'ln1w': stack(ln1w), 'ln1b': stack(ln1b),
        'fw1': stack(fw1, bf16), 'fb1': stack(fb1),
        'fw2': stack(fw2, bf16), 'fb2': stack(fb2),
        'ln2w': stack(ln2w), 'ln2b': stack(ln2b),
    }


def _pick_vmem_limit_bytes():
    # Generation-aware scoped-VMEM limit: ~85% of physical, capped at 100 MiB
    # (v5e/v6e have 128 MiB physical, v7x only 64 MiB). Safe fallback 32 MiB.
    try:
        cap = int(pltpu.get_tpu_info().vmem_capacity_bytes)
        return max(32 * 1024 * 1024, min(int(cap * 0.85), 100 * 1024 * 1024))
    except Exception:
        return 32 * 1024 * 1024


# ----------------------------------------------------------------------------
# Forward
# ----------------------------------------------------------------------------
@functools.partial(jax.jit, static_argnames=("num_heads", "approx_softmax"))
def mld_denoiser_forward(sample, timestep, encoder_hidden_states, params, *,
                         num_heads, approx_softmax=True):
    """sample: (B, N_latent, D); timestep: scalar; encoder_hidden_states: (B, T, C)."""
    B, N, D = sample.shape
    _, T, C = encoder_hidden_states.shape
    L, H = params['wq'].shape[0], params['wq'].shape[1]
    Dh = params['wq'].shape[3]
    F = params['fw1'].shape[-1]
    S = N + 1 + T
    if H != num_heads or H * Dh != D:
        raise ValueError("num_heads / latent_dim mismatch with parameters")
    max_len = params['pe'].shape[0]
    if S > max_len:
        raise ValueError(f"sequence length {S} exceeds PE table max_len {max_len}")

    # timesteps = timestep.expand(batch); time_proj (Timesteps) — tiny glue
    timesteps = jnp.broadcast_to(jnp.asarray(timestep), (B,))
    t_sin = get_timestep_embedding(timesteps, C, flip_sin_to_cos=True,
                                   downscale_freq_shift=0.0).reshape(B, 1, C)
    pe = params['pe'][:S]                                           # (S, D)

    # index maps: batch-indexed, constant, layer-streamed (3D / 4D)
    bmap = lambda b, l: (b, 0, 0)
    c2 = lambda b, l: (0, 0)
    l3 = lambda b, l: (l, 0, 0)
    l4 = lambda b, l: (l, 0, 0, 0)

    in_specs = [
        pl.BlockSpec((None, 1, C), bmap),                            # t_sin
        pl.BlockSpec((None, N, D), bmap),                            # sample
        pl.BlockSpec((None, T, C), bmap),                            # text
        pl.BlockSpec((S, D), c2),                                    # PE
        pl.BlockSpec((C, D), c2), pl.BlockSpec((1, D), c2),          # time mlp 1
        pl.BlockSpec((D, D), c2), pl.BlockSpec((1, D), c2),          # time mlp 2
        pl.BlockSpec((C, D), c2), pl.BlockSpec((1, D), c2),          # emb_proj
        pl.BlockSpec((None, H, D, Dh), l4), pl.BlockSpec((None, H, 1, Dh), l4),  # wq, bq
        pl.BlockSpec((None, H, D, Dh), l4), pl.BlockSpec((None, H, 1, Dh), l4),  # wk, bk
        pl.BlockSpec((None, H, D, Dh), l4), pl.BlockSpec((None, H, 1, Dh), l4),  # wv, bv
        pl.BlockSpec((None, H, Dh, D), l4), pl.BlockSpec((None, 1, D), l3),      # wo, bo
        pl.BlockSpec((None, 1, D), l3), pl.BlockSpec((None, 1, D), l3),          # norm1
        pl.BlockSpec((None, D, F), l3), pl.BlockSpec((None, 1, F), l3),          # ffn lin1
        pl.BlockSpec((None, F, D), l3), pl.BlockSpec((None, 1, D), l3),          # ffn lin2
        pl.BlockSpec((None, 1, D), l3), pl.BlockSpec((None, 1, D), l3),          # norm2
    ]
    # TODO(synk): on v5e production configs, deepen the streamed weight specs
    # (pipeline_mode=pl.Buffered(3)) so the per-layer weight DMA hides behind
    # one layer of compute on the slower HBM.
    out_spec = pl.BlockSpec((None, N, D), bmap)

    args = (t_sin, sample, encoder_hidden_states, pe,
            params['time_w1'], params['time_b1'],
            params['time_w2'], params['time_b2'],
            params['proj_w'], params['proj_b'],
            params['wq'], params['bq'], params['wk'], params['bk'],
            params['wv'], params['bv'], params['wo'], params['bo'],
            params['ln1w'], params['ln1b'],
            params['fw1'], params['fb1'], params['fw2'], params['fb2'],
            params['ln2w'], params['ln2b'])

    out = pl.pallas_call(
        functools.partial(_mld_layer_kernel, approx_recip=approx_softmax),
        out_shape=jax.ShapeDtypeStruct((B, N, D), jnp.float32),
        grid=(B, L),
        in_specs=in_specs,
        out_specs=out_spec,
        scratch_shapes=[pltpu.VMEM((S, D), jnp.float32)],   # persistent xseq carry
        compiler_params=pltpu.CompilerParams(
            dimension_semantics=("parallel", "arbitrary"),
            vmem_limit_bytes=_pick_vmem_limit_bytes(),
        ),
    )(*args)

    # TODO(synk): training-mode paths (dropouts, EmbedAction bernoulli masking),
    # 'action' condition, SkipTransformerEncoder / trans_dec / diffusion_only
    # variants are not exercised by this eval-mode 'text' vanilla-encoder config.
    # Production configs should keep D / 3D / FF multiples of 128 so stores stay
    # lane-dense (toy D=32 is unavoidably lane-padded).
    return (out,)


# ----------------------------------------------------------------------------
if __name__ == "__main__":
    B = 2            # batch
    N_LATENT = 1     # latent_dim[0]
    LATENT_DIM = 32  # latent_dim[-1]
    TEXT_DIM = 48    # text_encoded_dim
    T_TEXT = 4       # text tokens
    FF = 64          # ff_size
    HEADS = 4
    LAYERS = 2

    key = jax.random.PRNGKey(0)
    k_sample, k_text, k_params = jax.random.split(key, 3)

    sample = jax.random.normal(k_sample, (B, N_LATENT, LATENT_DIM), jnp.float32)
    encoder_hidden_states = jax.random.normal(k_text, (B, T_TEXT, TEXT_DIM),
                                              jnp.float32)
    timestep = jnp.array(37, dtype=jnp.int32)

    params = init_params(k_params, LATENT_DIM, TEXT_DIM, FF, LAYERS, HEADS,
                         max_len=64)

    (out,) = mld_denoiser_forward(sample, timestep, encoder_hidden_states,
                                  params, num_heads=HEADS)
    out = jax.block_until_ready(out)
    assert out.shape == (B, N_LATENT, LATENT_DIM)
    assert bool(jnp.all(jnp.isfinite(out)))
    print("KERNEL_OK")
</pallas_src>

<mosaic_0001>
module attributes {stable_mosaic.version = 11 : i64} {
  func.func @_mld_layer_kernel(%arg0: i32, %arg1: i32, %arg2: memref<1x1x48xf32, #tpu.memory_space<vmem>>, %arg3: memref<1x1x32xf32, #tpu.memory_space<vmem>>, %arg4: memref<1x4x48xf32, #tpu.memory_space<vmem>>, %arg5: memref<6x32xf32, #tpu.memory_space<vmem>>, %arg6: memref<48x32xbf16, #tpu.memory_space<vmem>>, %arg7: memref<1x32xf32, #tpu.memory_space<vmem>>, %arg8: memref<32x32xbf16, #tpu.memory_space<vmem>>, %arg9: memref<1x32xf32, #tpu.memory_space<vmem>>, %arg10: memref<48x32xbf16, #tpu.memory_space<vmem>>, %arg11: memref<1x32xf32, #tpu.memory_space<vmem>>, %arg12: memref<1x4x32x8xbf16, #tpu.memory_space<vmem>>, %arg13: memref<1x4x1x8xf32, #tpu.memory_space<vmem>>, %arg14: memref<1x4x32x8xbf16, #tpu.memory_space<vmem>>, %arg15: memref<1x4x1x8xf32, #tpu.memory_space<vmem>>, %arg16: memref<1x4x32x8xbf16, #tpu.memory_space<vmem>>, %arg17: memref<1x4x1x8xf32, #tpu.memory_space<vmem>>, %arg18: memref<1x4x8x32xbf16, #tpu.memory_space<vmem>>, %arg19: memref<1x1x32xf32, #tpu.memory_space<vmem>>, %arg20: memref<1x1x32xf32, #tpu.memory_space<vmem>>, %arg21: memref<1x1x32xf32, #tpu.memory_space<vmem>>, %arg22: memref<1x32x64xbf16, #tpu.memory_space<vmem>>, %arg23: memref<1x1x64xf32, #tpu.memory_space<vmem>>, %arg24: memref<1x64x32xbf16, #tpu.memory_space<vmem>>, %arg25: memref<1x1x32xf32, #tpu.memory_space<vmem>>, %arg26: memref<1x1x32xf32, #tpu.memory_space<vmem>>, %arg27: memref<1x1x32xf32, #tpu.memory_space<vmem>>, %arg28: memref<1x1x32xf32, #tpu.memory_space<vmem>>, %arg29: memref<6x32xf32, #tpu.memory_space<vmem>>) attributes {dimension_semantics = [#tpu.dimension_semantics<parallel>, #tpu.dimension_semantics<arbitrary>], iteration_bounds = array<i64: 2, 2>, scalar_prefetch = 0 : i64, scratch_operands = 1 : i64, tpu.core_type = #tpu.core_type<tc>, window_params = [{transform_indices = @transform_0, window_bounds = array<i64: 1, 1, 48>}, {transform_indices = @transform_1, window_bounds = array<i64: 1, 1, 32>}, {transform_indices = @transform_2, window_bounds = array<i64: 1, 4, 48>}, {pipeline_mode = #tpu.pipeline_mode<synchronous>, transform_indices = @transform_3, window_bounds = array<i64: 6, 32>}, {pipeline_mode = #tpu.pipeline_mode<synchronous>, transform_indices = @transform_4, window_bounds = array<i64: 48, 32>}, {pipeline_mode = #tpu.pipeline_mode<synchronous>, transform_indices = @transform_5, window_bounds = array<i64: 1, 32>}, {pipeline_mode = #tpu.pipeline_mode<synchronous>, transform_indices = @transform_6, window_bounds = array<i64: 32, 32>}, {pipeline_mode = #tpu.pipeline_mode<synchronous>, transform_indices = @transform_7, window_bounds = array<i64: 1, 32>}, {pipeline_mode = #tpu.pipeline_mode<synchronous>, transform_indices = @transform_8, window_bounds = array<i64: 48, 32>}, {pipeline_mode = #tpu.pipeline_mode<synchronous>, transform_indices = @transform_9, window_bounds = array<i64: 1, 32>}, {transform_indices = @transform_10, window_bounds = array<i64: 1, 4, 32, 8>}, {transform_indices = @transform_11, window_bounds = array<i64: 1, 4, 1, 8>}, {transform_indices = @transform_12, window_bounds = array<i64: 1, 4, 32, 8>}, {transform_indices = @transform_13, window_bounds = array<i64: 1, 4, 1, 8>}, {transform_indices = @transform_14, window_bounds = array<i64: 1, 4, 32, 8>}, {transform_indices = @transform_15, window_bounds = array<i64: 1, 4, 1, 8>}, {transform_indices = @transform_16, window_bounds = array<i64: 1, 4, 8, 32>}, {transform_indices = @transform_17, window_bounds = array<i64: 1, 1, 32>}, {transform_indices = @transform_18, window_bounds = array<i64: 1, 1, 32>}, {transform_indices = @transform_19, window_bounds = array<i64: 1, 1, 32>}, {transform_indices = @transform_20, window_bounds = array<i64: 1, 32, 64>}, {transform_indices = @transform_21, window_bounds = array<i64: 1, 1, 64>}, {transform_indices = @transform_22, window_bounds = array<i64: 1, 64, 32>}, {transform_indices = @transform_23, window_bounds = array<i64: 1, 1, 32>}, {transform_indices = @transform_24, window_bounds = array<i64: 1, 1, 32>}, {transform_indices = @transform_25, window_bounds = array<i64: 1, 1, 32>}, {transform_indices = @transform_26, window_bounds = array<i64: 1, 1, 32>}]} {
    %c0_i32 = arith.constant 0 : i32
    %0 = arith.cmpi eq, %arg1, %c0_i32 : i32
    %1 = arith.extui %0 : i1 to i32
    %c0_i32_0 = arith.constant 0 : i32
    %2 = arith.cmpi ne, %1, %c0_i32_0 : i32
    scf.if %2 {
      %c0_188 = arith.constant 0 : index
      %c0_189 = arith.constant 0 : index
      %c0_190 = arith.constant 0 : index
      %256 = vector.load %arg2[%c0_188, %c0_189, %c0_190] : memref<1x1x48xf32, #tpu.memory_space<vmem>>, vector<1x1x48xf32>
      %257 = vector.shape_cast %256 : vector<1x1x48xf32> to vector<1x48xf32>
      %258 = arith.truncf %257 : vector<1x48xf32> to vector<1x48xbf16>
      %c0_191 = arith.constant 0 : index
      %c0_192 = arith.constant 0 : index
      %259 = vector.load %arg6[%c0_191, %c0_192] : memref<48x32xbf16, #tpu.memory_space<vmem>>, vector<48x32xbf16>
      %cst_193 = arith.constant dense<0.000000e+00> : vector<1x32xf32>
      %260 = tpu.matmul %258, %259, %cst_193 {dimension_numbers = #tpu.dot_dimension_numbers<[1], [0], [0], [1], [0, 0, 1, 1], [], []>} : vector<1x48xbf16>, vector<48x32xbf16>, vector<1x32xf32> -> vector<1x32xf32>
      %c0_194 = arith.constant 0 : index
      %c0_195 = arith.constant 0 : index
      %261 = vector.load %arg7[%c0_194, %c0_195] : memref<1x32xf32, #tpu.memory_space<vmem>>, vector<1x32xf32>
      %262 = arith.addf %260, %261 : vector<1x32xf32>
      %263 = arith.negf %262 : vector<1x32xf32>
      %264 = math.exp %263 : vector<1x32xf32>
      %cst_196 = arith.constant 1.000000e+00 : f32
      %265 = vector.broadcast %cst_196 : f32 to vector<1x32xf32>
      %266 = arith.addf %265, %264 : vector<1x32xf32>
      %267 = arith.divf %265, %266 : vector<1x32xf32>
      %268 = arith.mulf %262, %267 : vector<1x32xf32>
      %269 = arith.truncf %268 : vector<1x32xf32> to vector<1x32xbf16>
      %c0_197 = arith.constant 0 : index
      %c0_198 = arith.constant 0 : index
      %270 = vector.load %arg8[%c0_197, %c0_198] : memref<32x32xbf16, #tpu.memory_space<vmem>>, vector<32x32xbf16>
      %cst_199 = arith.constant dense<0.000000e+00> : vector<1x32xf32>
      %271 = tpu.matmul %269, %270, %cst_199 {dimension_numbers = #tpu.dot_dimension_numbers<[1], [0], [0], [1], [0, 0, 1, 1], [], []>} : vector<1x32xbf16>, vector<32x32xbf16>, vector<1x32xf32> -> vector<1x32xf32>
      %c0_200 = arith.constant 0 : index
      %c0_201 = arith.constant 0 : index
      %272 = vector.load %arg9[%c0_200, %c0_201] : memref<1x32xf32, #tpu.memory_space<vmem>>, vector<1x32xf32>
      %273 = arith.addf %271, %272 : vector<1x32xf32>
      %c0_202 = arith.constant 0 : index
      %c0_203 = arith.constant 0 : index
      %c0_204 = arith.constant 0 : index
      %274 = vector.load %arg4[%c0_202, %c0_203, %c0_204] : memref<1x4x48xf32, #tpu.memory_space<vmem>>, vector<1x4x48xf32>
      %275 = vector.shape_cast %274 : vector<1x4x48xf32> to vector<4x48xf32>
      %cst_205 = arith.constant 0.000000e+00 : f32
      %276 = vector.broadcast %cst_205 : f32 to vector<4x48xf32>
      %277 = arith.maximumf %275, %276 : vector<4x48xf32>
      %278 = arith.truncf %277 : vector<4x48xf32> to vector<4x48xbf16>
      %c0_206 = arith.constant 0 : index
      %c0_207 = arith.constant 0 : index
      %279 = vector.load %arg10[%c0_206, %c0_207] : memref<48x32xbf16, #tpu.memory_space<vmem>>, vector<48x32xbf16>
      %cst_208 = arith.constant dense<0.000000e+00> : vector<4x32xf32>
      %280 = tpu.matmul %278, %279, %cst_208 {dimension_numbers = #tpu.dot_dimension_numbers<[1], [0], [0], [1], [0, 0, 1, 1], [], []>} : vector<4x48xbf16>, vector<48x32xbf16>, vector<4x32xf32> -> vector<4x32xf32>
      %c0_209 = arith.constant 0 : index
      %c0_210 = arith.constant 0 : index
      %281 = vector.load %arg11[%c0_209, %c0_210] : memref<1x32xf32, #tpu.memory_space<vmem>>, vector<1x32xf32>
      %282 = vector.broadcast %281 : vector<1x32xf32> to vector<4x32xf32>
      %283 = arith.addf %280, %282 : vector<4x32xf32>
      %c0_211 = arith.constant 0 : index
      %c0_212 = arith.constant 0 : index
      %c0_213 = arith.constant 0 : index
      %284 = vector.load %arg3[%c0_211, %c0_212, %c0_213] : memref<1x1x32xf32, #tpu.memory_space<vmem>>, vector<1x1x32xf32>
      %285 = vector.shape_cast %284 : vector<1x1x32xf32> to vector<1x32xf32>
      %286 = tpu.concatenate %285, %273, %283 in 0 : vector<1x32xf32>, vector<1x32xf32>, vector<4x32xf32> -> vector<6x32xf32>
      %c0_214 = arith.constant 0 : index
      %c0_215 = arith.constant 0 : index
      %287 = vector.load %arg5[%c0_214, %c0_215] : memref<6x32xf32, #tpu.memory_space<vmem>>, vector<6x32xf32>
      %288 = arith.addf %286, %287 : vector<6x32xf32>
      %c0_216 = arith.constant 0 : index
      %c0_217 = arith.constant 0 : index
      %289 = vector.load %arg29[%c0_216, %c0_217] : memref<6x32xf32, #tpu.memory_space<vmem>>, vector<6x32xf32>
      tpu.vector_store %arg29[%c0_216, %c0_217], %288 {strides = array<i32>} : memref<6x32xf32, #tpu.memory_space<vmem>>, vector<6x32xf32>,
    } else {
    }
    %c0 = arith.constant 0 : index
    %c0_1 = arith.constant 0 : index
    %3 = vector.load %arg29[%c0, %c0_1] : memref<6x32xf32, #tpu.memory_space<vmem>>, vector<6x32xf32>
    %4 = arith.truncf %3 : vector<6x32xf32> to vector<6x32xbf16>
    %cst = arith.constant 0.000000e+00 : f32
    %5 = vector.broadcast %cst : f32 to vector<6x32xf32>
    %c0_2 = arith.constant 0 : index
    %c0_3 = arith.constant 0 : index
    %c0_4 = arith.constant 0 : index
    %c0_5 = arith.constant 0 : index
    %6 = vector.load %arg12[%c0_2, %c0_3, %c0_4, %c0_5] : memref<1x4x32x8xbf16, #tpu.memory_space<vmem>>, vector<1x1x32x8xbf16>
    %7 = vector.shape_cast %6 : vector<1x1x32x8xbf16> to vector<32x8xbf16>
    %cst_6 = arith.constant dense<0.000000e+00> : vector<6x8xf32>
    %8 = tpu.matmul %4, %7, %cst_6 {dimension_numbers = #tpu.dot_dimension_numbers<[1], [0], [0], [1], [0, 0, 1, 1], [], []>} : vector<6x32xbf16>, vector<32x8xbf16>, vector<6x8xf32> -> vector<6x8xf32>
    %c0_7 = arith.constant 0 : index
    %c0_8 = arith.constant 0 : index
    %c0_9 = arith.constant 0 : index
    %c0_10 = arith.constant 0 : index
    %9 = vector.load %arg13[%c0_7, %c0_8, %c0_9, %c0_10] : memref<1x4x1x8xf32, #tpu.memory_space<vmem>>, vector<1x1x1x8xf32>
    %10 = vector.shape_cast %9 : vector<1x1x1x8xf32> to vector<1x8xf32>
    %11 = vector.broadcast %10 : vector<1x8xf32> to vector<6x8xf32>
    %12 = arith.addf %8, %11 : vector<6x8xf32>
    %c0_11 = arith.constant 0 : index
    %c0_12 = arith.constant 0 : index
    %c0_13 = arith.constant 0 : index
    %c0_14 = arith.constant 0 : index
    %13 = vector.load %arg14[%c0_11, %c0_12, %c0_13, %c0_14] : memref<1x4x32x8xbf16, #tpu.memory_space<vmem>>, vector<1x1x32x8xbf16>
    %14 = vector.shape_cast %13 : vector<1x1x32x8xbf16> to vector<32x8xbf16>
    %cst_15 = arith.constant dense<0.000000e+00> : vector<6x8xf32>
    %15 = tpu.matmul %4, %14, %cst_15 {dimension_numbers = #tpu.dot_dimension_numbers<[1], [0], [0], [1], [0, 0, 1, 1], [], []>} : vector<6x32xbf16>, vector<32x8xbf16>, vector<6x8xf32> -> vector<6x8xf32>
    %c0_16 = arith.constant 0 : index
    %c0_17 = arith.constant 0 : index
    %c0_18 = arith.constant 0 : index
    %c0_19 = arith.constant 0 : index
    %16 = vector.load %arg15[%c0_16, %c0_17, %c0_18, %c0_19] : memref<1x4x1x8xf32, #tpu.memory_space<vmem>>, vector<1x1x1x8xf32>
    %17 = vector.shape_cast %16 : vector<1x1x1x8xf32> to vector<1x8xf32>
    %18 = vector.broadcast %17 : vector<1x8xf32> to vector<6x8xf32>
    %19 = arith.addf %15, %18 : vector<6x8xf32>
    %c0_20 = arith.constant 0 : index
    %c0_21 = arith.constant 0 : index
    %c0_22 = arith.constant 0 : index
    %c0_23 = arith.constant 0 : index
    %20 = vector.load %arg16[%c0_20, %c0_21, %c0_22, %c0_23] : memref<1x4x32x8xbf16, #tpu.memory_space<vmem>>, vector<1x1x32x8xbf16>
    %21 = vector.shape_cast %20 : vector<1x1x32x8xbf16> to vector<32x8xbf16>
    %cst_24 = arith.constant dense<0.000000e+00> : vector<6x8xf32>
    %22 = tpu.matmul %4, %21, %cst_24 {dimension_numbers = #tpu.dot_dimension_numbers<[1], [0], [0], [1], [0, 0, 1, 1], [], []>} : vector<6x32xbf16>, vector<32x8xbf16>, vector<6x8xf32> -> vector<6x8xf32>
    %c0_25 = arith.constant 0 : index
    %c0_26 = arith.constant 0 : index
    %c0_27 = arith.constant 0 : index
    %c0_28 = arith.constant 0 : index
    %23 = vector.load %arg17[%c0_25, %c0_26, %c0_27, %c0_28] : memref<1x4x1x8xf32, #tpu.memory_space<vmem>>, vector<1x1x1x8xf32>
    %24 = vector.shape_cast %23 : vector<1x1x1x8xf32> to vector<1x8xf32>
    %25 = vector.broadcast %24 : vector<1x8xf32> to vector<6x8xf32>
    %26 = arith.addf %22, %25 : vector<6x8xf32>
    %27 = arith.truncf %12 : vector<6x8xf32> to vector<6x8xbf16>
    %28 = arith.truncf %19 : vector<6x8xf32> to vector<6x8xbf16>
    %cst_29 = arith.constant dense<0.000000e+00> : vector<6x6xf32>
    %29 = tpu.matmul %27, %28, %cst_29 {dimension_numbers = #tpu.dot_dimension_numbers<[1], [1], [0], [0], [0, 0, 1, 0], [], []>} : vector<6x8xbf16>, vector<6x8xbf16>, vector<6x6xf32> -> vector<6x6xf32>
    %cst_30 = arith.constant dense<0xFF800000> : vector<6xf32>
    %30 = vector.multi_reduction <maximumf>, %29, %cst_30 [1] : vector<6x6xf32> to vector<6xf32>
    %31 = vector.shape_cast %30 : vector<6xf32> to vector<6x1xf32>
    %32 = vector.broadcast %31 : vector<6x1xf32> to vector<6x6xf32>
    %33 = arith.subf %29, %32 : vector<6x6xf32>
    %34 = math.exp %33 : vector<6x6xf32>
    %cst_31 = arith.constant dense<0.000000e+00> : vector<6xf32>
    %35 = vector.multi_reduction <add>, %34, %cst_31 [1] : vector<6x6xf32> to vector<6xf32>
    %36 = vector.shape_cast %35 : vector<6xf32> to vector<6x1xf32>
    %37 = tpu.reciprocal %36 {approx = true} : vector<6x1xf32> -> vector<6x1xf32>
    %38 = vector.broadcast %37 : vector<6x1xf32> to vector<6x6xf32>
    %39 = arith.mulf %34, %38 : vector<6x6xf32>
    %40 = arith.truncf %39 : vector<6x6xf32> to vector<6x6xbf16>
    %41 = arith.truncf %26 : vector<6x8xf32> to vector<6x8xbf16>
    %cst_32 = arith.constant dense<0.000000e+00> : vector<6x8xf32>
    %42 = tpu.matmul %40, %41, %cst_32 {dimension_numbers = #tpu.dot_dimension_numbers<[1], [0], [0], [1], [0, 0, 1, 1], [], []>} : vector<6x6xbf16>, vector<6x8xbf16>, vector<6x8xf32> -> vector<6x8xf32>
    %43 = arith.truncf %42 : vector<6x8xf32> to vector<6x8xbf16>
    %c0_33 = arith.constant 0 : index
    %c0_34 = arith.constant 0 : index
    %c0_35 = arith.constant 0 : index
    %c0_36 = arith.constant 0 : index
    %44 = vector.load %arg18[%c0_33, %c0_34, %c0_35, %c0_36] : memref<1x4x8x32xbf16, #tpu.memory_space<vmem>>, vector<1x1x8x32xbf16>
    %45 = vector.shape_cast %44 : vector<1x1x8x32xbf16> to vector<8x32xbf16>
    %cst_37 = arith.constant dense<0.000000e+00> : vector<6x32xf32>
    %46 = tpu.matmul %43, %45, %cst_37 {dimension_numbers = #tpu.dot_dimension_numbers<[1], [0], [0], [1], [0, 0, 1, 1], [], []>} : vector<6x8xbf16>, vector<8x32xbf16>, vector<6x32xf32> -> vector<6x32xf32>
    %47 = arith.addf %5, %46 : vector<6x32xf32>
    %c0_38 = arith.constant 0 : index
    %c1 = arith.constant 1 : index
    %c0_39 = arith.constant 0 : index
    %c0_40 = arith.constant 0 : index
    %48 = vector.load %arg12[%c0_38, %c1, %c0_39, %c0_40] : memref<1x4x32x8xbf16, #tpu.memory_space<vmem>>, vector<1x1x32x8xbf16>
    %49 = vector.shape_cast %48 : vector<1x1x32x8xbf16> to vector<32x8xbf16>
    %cst_41 = arith.constant dense<0.000000e+00> : vector<6x8xf32>
    %50 = tpu.matmul %4, %49, %cst_41 {dimension_numbers = #tpu.dot_dimension_numbers<[1], [0], [0], [1], [0, 0, 1, 1], [], []>} : vector<6x32xbf16>, vector<32x8xbf16>, vector<6x8xf32> -> vector<6x8xf32>
    %c0_42 = arith.constant 0 : index
    %c1_43 = arith.constant 1 : index
    %c0_44 = arith.constant 0 : index
    %c0_45 = arith.constant 0 : index
    %51 = vector.load %arg13[%c0_42, %c1_43, %c0_44, %c0_45] : memref<1x4x1x8xf32, #tpu.memory_space<vmem>>, vector<1x1x1x8xf32>
    %52 = vector.shape_cast %51 : vector<1x1x1x8xf32> to vector<1x8xf32>
    %53 = vector.broadcast %52 : vector<1x8xf32> to vector<6x8xf32>
    %54 = arith.addf %50, %53 : vector<6x8xf32>
    %c0_46 = arith.constant 0 : index
    %c1_47 = arith.constant 1 : index
    %c0_48 = arith.constant 0 : index
    %c0_49 = arith.constant 0 : index
    %55 = vector.load %arg14[%c0_46, %c1_47, %c0_48, %c0_49] : memref<1x4x32x8xbf16, #tpu.memory_space<vmem>>, vector<1x1x32x8xbf16>
    %56 = vector.shape_cast %55 : vector<1x1x32x8xbf16> to vector<32x8xbf16>
    %cst_50 = arith.constant dense<0.000000e+00> : vector<6x8xf32>
    %57 = tpu.matmul %4, %56, %cst_50 {dimension_numbers = #tpu.dot_dimension_numbers<[1], [0], [0], [1], [0, 0, 1, 1], [], []>} : vector<6x32xbf16>, vector<32x8xbf16>, vector<6x8xf32> -> vector<6x8xf32>
    %c0_51 = arith.constant 0 : index
    %c1_52 = arith.constant 1 : index
    %c0_53 = arith.constant 0 : index
    %c0_54 = arith.constant 0 : index
    %58 = vector.load %arg15[%c0_51, %c1_52, %c0_53, %c0_54] : memref<1x4x1x8xf32, #tpu.memory_space<vmem>>, vector<1x1x1x8xf32>
    %59 = vector.shape_cast %58 : vector<1x1x1x8xf32> to vector<1x8xf32>
    %60 = vector.broadcast %59 : vector<1x8xf32> to vector<6x8xf32>
    %61 = arith.addf %57, %60 : vector<6x8xf32>
    %c0_55 = arith.constant 0 : index
    %c1_56 = arith.constant 1 : index
    %c0_57 = arith.constant 0 : index
    %c0_58 = arith.constant 0 : index
    %62 = vector.load %arg16[%c0_55, %c1_56, %c0_57, %c0_58] : memref<1x4x32x8xbf16, #tpu.memory_space<vmem>>, vector<1x1x32x8xbf16>
    %63 = vector.shape_cast %62 : vector<1x1x32x8xbf16> to vector<32x8xbf16>
    %cst_59 = arith.constant dense<0.000000e+00> : vector<6x8xf32>
    %64 = tpu.matmul %4, %63, %cst_59 {dimension_numbers = #tpu.dot_dimension_numbers<[1], [0], [0], [1], [0, 0, 1, 1], [], []>} : vector<6x32xbf16>, vector<32x8xbf16>, vector<6x8xf32> -> vector<6x8xf32>
    %c0_60 = arith.constant 0 : index
    %c1_61 = arith.constant 1 : index
    %c0_62 = arith.constant 0 : index
    %c0_63 = arith.constant 0 : index
    %65 = vector.load %arg17[%c0_60, %c1_61, %c0_62, %c0_63] : memref<1x4x1x8xf32, #tpu.memory_space<vmem>>, vector<1x1x1x8xf32>
    %66 = vector.shape_cast %65 : vector<1x1x1x8xf32> to vector<1x8xf32>
    %67 = vector.broadcast %66 : vector<1x8xf32> to vector<6x8xf32>
    %68 = arith.addf %64, %67 : vector<6x8xf32>
    %69 = arith.truncf %54 : vector<6x8xf32> to vector<6x8xbf16>
    %70 = arith.truncf %61 : vector<6x8xf32> to vector<6x8xbf16>
    %cst_64 = arith.constant dense<0.000000e+00> : vector<6x6xf32>
    %71 = tpu.matmul %69, %70, %cst_64 {dimension_numbers = #tpu.dot_dimension_numbers<[1], [1], [0], [0], [0, 0, 1, 0], [], []>} : vector<6x8xbf16>, vector<6x8xbf16>, vector<6x6xf32> -> vector<6x6xf32>
    %cst_65 = arith.constant dense<0xFF800000> : vector<6xf32>
    %72 = vector.multi_reduction <maximumf>, %71, %cst_65 [1] : vector<6x6xf32> to vector<6xf32>
    %73 = vector.shape_cast %72 : vector<6xf32> to vector<6x1xf32>
    %74 = vector.broadcast %73 : vector<6x1xf32> to vector<6x6xf32>
    %75 = arith.subf %71, %74 : vector<6x6xf32>
    %76 = math.exp %75 : vector<6x6xf32>
    %cst_66 = arith.constant dense<0.000000e+00> : vector<6xf32>
    %77 = vector.multi_reduction <add>, %76, %cst_66 [1] : vector<6x6xf32> to vector<6xf32>
    %78 = vector.shape_cast %77 : vector<6xf32> to vector<6x1xf32>
    %79 = tpu.reciprocal %78 {approx = true} : vector<6x1xf32> -> vector<6x1xf32>
    %80 = vector.broadcast %79 : vector<6x1xf32> to vector<6x6xf32>
    %81 = arith.mulf %76, %80 : vector<6x6xf32>
    %82 = arith.truncf %81 : vector<6x6xf32> to vector<6x6xbf16>
    %83 = arith.truncf %68 : vector<6x8xf32> to vector<6x8xbf16>
    %cst_67 = arith.constant dense<0.000000e+00> : vector<6x8xf32>
    %84 = tpu.matmul %82, %83, %cst_67 {dimension_numbers = #tpu.dot_dimension_numbers<[1], [0], [0], [1], [0, 0, 1, 1], [], []>} : vector<6x6xbf16>, vector<6x8xbf16>, vector<6x8xf32> -> vector<6x8xf32>
    %85 = arith.truncf %84 : vector<6x8xf32> to vector<6x8xbf16>
    %c0_68 = arith.constant 0 : index
    %c1_69 = arith.constant 1 : index
    %c0_70 = arith.constant 0 : index
    %c0_71 = arith.constant 0 : index
    %86 = vector.load %arg18[%c0_68, %c1_69, %c0_70, %c0_71] : memref<1x4x8x32xbf16, #tpu.memory_space<vmem>>, vector<1x1x8x32xbf16>
    %87 = vector.shape_cast %86 : vector<1x1x8x32xbf16> to vector<8x32xbf16>
    %cst_72 = arith.constant dense<0.000000e+00> : vector<6x32xf32>
    %88 = tpu.matmul %85, %87, %cst_72 {dimension_numbers = #tpu.dot_dimension_numbers<[1], [0], [0], [1], [0, 0, 1, 1], [], []>} : vector<6x8xbf16>, vector<8x32xbf16>, vector<6x32xf32> -> vector<6x32xf32>
    %89 = arith.addf %47, %88 : vector<6x32xf32>
    %c0_73 = arith.constant 0 : index
    %c2 = arith.constant 2 : index
    %c0_74 = arith.constant 0 : index
    %c0_75 = arith.constant 0 : index
    %90 = vector.load %arg12[%c0_73, %c2, %c0_74, %c0_75] : memref<1x4x32x8xbf16, #tpu.memory_space<vmem>>, vector<1x1x32x8xbf16>
    %91 = vector.shape_cast %90 : vector<1x1x32x8xbf16> to vector<32x8xbf16>
    %cst_76 = arith.constant dense<0.000000e+00> : vector<6x8xf32>
    %92 = tpu.matmul %4, %91, %cst_76 {dimension_numbers = #tpu.dot_dimension_numbers<[1], [0], [0], [1], [0, 0, 1, 1], [], []>} : vector<6x32xbf16>, vector<32x8xbf16>, vector<6x8xf32> -> vector<6x8xf32>
    %c0_77 = arith.constant 0 : index
    %c2_78 = arith.constant 2 : index
    %c0_79 = arith.constant 0 : index
    %c0_80 = arith.constant 0 : index
    %93 = vector.load %arg13[%c0_77, %c2_78, %c0_79, %c0_80] : memref<1x4x1x8xf32, #tpu.memory_space<vmem>>, vector<1x1x1x8xf32>
    %94 = vector.shape_cast %93 : vector<1x1x1x8xf32> to vector<1x8xf32>
    %95 = vector.broadcast %94 : vector<1x8xf32> to vector<6x8xf32>
    %96 = arith.addf %92, %95 : vector<6x8xf32>
    %c0_81 = arith.constant 0 : index
    %c2_82 = arith.constant 2 : index
    %c0_83 = arith.constant 0 : index
    %c0_84 = arith.constant 0 : index
    %97 = vector.load %arg14[%c0_81, %c2_82, %c0_83, %c0_84] : memref<1x4x32x8xbf16, #tpu.memory_space<vmem>>, vector<1x1x32x8xbf16>
    %98 = vector.shape_cast %97 : vector<1x1x32x8xbf16> to vector<32x8xbf16>
    %cst_85 = arith.constant dense<0.000000e+00> : vector<6x8xf32>
    %99 = tpu.matmul %4, %98, %cst_85 {dimension_numbers = #tpu.dot_dimension_numbers<[1], [0], [0], [1], [0, 0, 1, 1], [], []>} : vector<6x32xbf16>, vector<32x8xbf16>, vector<6x8xf32> -> vector<6x8xf32>
    %c0_86 = arith.constant 0 : index
    %c2_87 = arith.constant 2 : index
    %c0_88 = arith.constant 0 : index
    %c0_89 = arith.constant 0 : index
    %100 = vector.load %arg15[%c0_86, %c2_87, %c0_88, %c0_89] : memref<1x4x1x8xf32, #tpu.memory_space<vmem>>, vector<1x1x1x8xf32>
    %101 = vector.shape_cast %100 : vector<1x1x1x8xf32> to vector<1x8xf32>
    %102 = vector.broadcast %101 : vector<1x8xf32> to vector<6x8xf32>
    %103 = arith.addf %99, %102 : vector<6x8xf32>
    %c0_90 = arith.constant 0 : index
    %c2_91 = arith.constant 2 : index
    %c0_92 = arith.constant 0 : index
    %c0_93 = arith.constant 0 : index
    %104 = vector.load %arg16[%c0_90, %c2_91, %c0_92, %c0_93] : memref<1x4x32x8xbf16, #tpu.memory_space<vmem>>, vector<1x1x32x8xbf16>
    %105 = vector.shape_cast %104 : vector<1x1x32x8xbf16> to vector<32x8xbf16>
    %cst_94 = arith.constant dense<0.000000e+00> : vector<6x8xf32>
    %106 = tpu.matmul %4, %105, %cst_94 {dimension_numbers = #tpu.dot_dimension_numbers<[1], [0], [0], [1], [0, 0, 1, 1], [], []>} : vector<6x32xbf16>, vector<32x8xbf16>, vector<6x8xf32> -> vector<6x8xf32>
    %c0_95 = arith.constant 0 : index
    %c2_96 = arith.constant 2 : index
    %c0_97 = arith.constant 0 : index
    %c0_98 = arith.constant 0 : index
    %107 = vector.load %arg17[%c0_95, %c2_96, %c0_97, %c0_98] : memref<1x4x1x8xf32, #tpu.memory_space<vmem>>, vector<1x1x1x8xf32>
    %108 = vector.shape_cast %107 : vector<1x1x1x8xf32> to vector<1x8xf32>
    %109 = vector.broadcast %108 : vector<1x8xf32> to vector<6x8xf32>
    %110 = arith.addf %106, %109 : vector<6x8xf32>
    %111 = arith.truncf %96 : vector<6x8xf32> to vector<6x8xbf16>
    %112 = arith.truncf %103 : vector<6x8xf32> to vector<6x8xbf16>
    %cst_99 = arith.constant dense<0.000000e+00> : vector<6x6xf32>
    %113 = tpu.matmul %111, %112, %cst_99 {dimension_numbers = #tpu.dot_dimension_numbers<[1], [1], [0], [0], [0, 0, 1, 0], [], []>} : vector<6x8xbf16>, vector<6x8xbf16>, vector<6x6xf32> -> vector<6x6xf32>
    %cst_100 = arith.constant dense<0xFF800000> : vector<6xf32>
    %114 = vector.multi_reduction <maximumf>, %113, %cst_100 [1] : vector<6x6xf32> to vector<6xf32>
    %115 = vector.shape_cast %114 : vector<6xf32> to vector<6x1xf32>
    %116 = vector.broadcast %115 : vector<6x1xf32> to vector<6x6xf32>
    %117 = arith.subf %113, %116 : vector<6x6xf32>
    %118 = math.exp %117 : vector<6x6xf32>
    %cst_101 = arith.constant dense<0.000000e+00> : vector<6xf32>
    %119 = vector.multi_reduction <add>, %118, %cst_101 [1] : vector<6x6xf32> to vector<6xf32>
    %120 = vector.shape_cast %119 : vector<6xf32> to vector<6x1xf32>
    %121 = tpu.reciprocal %120 {approx = true} : vector<6x1xf32> -> vector<6x1xf32>
    %122 = vector.broadcast %121 : vector<6x1xf32> to vector<6x6xf32>
    %123 = arith.mulf %118, %122 : vector<6x6xf32>
    %124 = arith.truncf %123 : vector<6x6xf32> to vector<6x6xbf16>
    %125 = arith.truncf %110 : vector<6x8xf32> to vector<6x8xbf16>
    %cst_102 = arith.constant dense<0.000000e+00> : vector<6x8xf32>
    %126 = tpu.matmul %124, %125, %cst_102 {dimension_numbers = #tpu.dot_dimension_numbers<[1], [0], [0], [1], [0, 0, 1, 1], [], []>} : vector<6x6xbf16>, vector<6x8xbf16>, vector<6x8xf32> -> vector<6x8xf32>
    %127 = arith.truncf %126 : vector<6x8xf32> to vector<6x8xbf16>
    %c0_103 = arith.constant 0 : index
    %c2_104 = arith.constant 2 : index
    %c0_105 = arith.constant 0 : index
    %c0_106 = arith.constant 0 : index
    %128 = vector.load %arg18[%c0_103, %c2_104, %c0_105, %c0_106] : memref<1x4x8x32xbf16, #tpu.memory_space<vmem>>, vector<1x1x8x32xbf16>
    %129 = vector.shape_cast %128 : vector<1x1x8x32xbf16> to vector<8x32xbf16>
    %cst_107 = arith.constant dense<0.000000e+00> : vector<6x32xf32>
    %130 = tpu.matmul %127, %129, %cst_107 {dimension_numbers = #tpu.dot_dimension_numbers<[1], [0], [0], [1], [0, 0, 1, 1], [], []>} : vector<6x8xbf16>, vector<8x32xbf16>, vector<6x32xf32> -> vector<6x32xf32>
    %131 = arith.addf %89, %130 : vector<6x32xf32>
    %c0_108 = arith.constant 0 : index
    %c3 = arith.constant 3 : index
    %c0_109 = arith.constant 0 : index
    %c0_110 = arith.constant 0 : index
    %132 = vector.load %arg12[%c0_108, %c3, %c0_109, %c0_110] : memref<1x4x32x8xbf16, #tpu.memory_space<vmem>>, vector<1x1x32x8xbf16>
    %133 = vector.shape_cast %132 : vector<1x1x32x8xbf16> to vector<32x8xbf16>
    %cst_111 = arith.constant dense<0.000000e+00> : vector<6x8xf32>
    %134 = tpu.matmul %4, %133, %cst_111 {dimension_numbers = #tpu.dot_dimension_numbers<[1], [0], [0], [1], [0, 0, 1, 1], [], []>} : vector<6x32xbf16>, vector<32x8xbf16>, vector<6x8xf32> -> vector<6x8xf32>
    %c0_112 = arith.constant 0 : index
    %c3_113 = arith.constant 3 : index
    %c0_114 = arith.constant 0 : index
    %c0_115 = arith.constant 0 : index
    %135 = vector.load %arg13[%c0_112, %c3_113, %c0_114, %c0_115] : memref<1x4x1x8xf32, #tpu.memory_space<vmem>>, vector<1x1x1x8xf32>
    %136 = vector.shape_cast %135 : vector<1x1x1x8xf32> to vector<1x8xf32>
    %137 = vector.broadcast %136 : vector<1x8xf32> to vector<6x8xf32>
    %138 = arith.addf %134, %137 : vector<6x8xf32>
    %c0_116 = arith.constant 0 : index
    %c3_117 = arith.constant 3 : index
    %c0_118 = arith.constant 0 : index
    %c0_119 = arith.constant 0 : index
    %139 = vector.load %arg14[%c0_116, %c3_117, %c0_118, %c0_119] : memref<1x4x32x8xbf16, #tpu.memory_space<vmem>>, vector<1x1x32x8xbf16>
    %140 = vector.shape_cast %139 : vector<1x1x32x8xbf16> to vector<32x8xbf16>
    %cst_120 = arith.constant dense<0.000000e+00> : vector<6x8xf32>
    %141 = tpu.matmul %4, %140, %cst_120 {dimension_numbers = #tpu.dot_dimension_numbers<[1], [0], [0], [1], [0, 0, 1, 1], [], []>} : vector<6x32xbf16>, vector<32x8xbf16>, vector<6x8xf32> -> vector<6x8xf32>
    %c0_121 = arith.constant 0 : index
    %c3_122 = arith.constant 3 : index
    %c0_123 = arith.constant 0 : index
    %c0_124 = arith.constant 0 : index
    %142 = vector.load %arg15[%c0_121, %c3_122, %c0_123, %c0_124] : memref<1x4x1x8xf32, #tpu.memory_space<vmem>>, vector<1x1x1x8xf32>
    %143 = vector.shape_cast %142 : vector<1x1x1x8xf32> to vector<1x8xf32>
    %144 = vector.broadcast %143 : vector<1x8xf32> to vector<6x8xf32>
    %145 = arith.addf %141, %144 : vector<6x8xf32>
    %c0_125 = arith.constant 0 : index
    %c3_126 = arith.constant 3 : index
    %c0_127 = arith.constant 0 : index
    %c0_128 = arith.constant 0 : index
    %146 = vector.load %arg16[%c0_125, %c3_126, %c0_127, %c0_128] : memref<1x4x32x8xbf16, #tpu.memory_space<vmem>>, vector<1x1x32x8xbf16>
    %147 = vector.shape_cast %146 : vector<1x1x32x8xbf16> to vector<32x8xbf16>
    %cst_129 = arith.constant dense<0.000000e+00> : vector<6x8xf32>
    %148 = tpu.matmul %4, %147, %cst_129 {dimension_numbers = #tpu.dot_dimension_numbers<[1], [0], [0], [1], [0, 0, 1, 1], [], []>} : vector<6x32xbf16>, vector<32x8xbf16>, vector<6x8xf32> -> vector<6x8xf32>
    %c0_130 = arith.constant 0 : index
    %c3_131 = arith.constant 3 : index
    %c0_132 = arith.constant 0 : index
    %c0_133 = arith.constant 0 : index
    %149 = vector.load %arg17[%c0_130, %c3_131, %c0_132, %c0_133] : memref<1x4x1x8xf32, #tpu.memory_space<vmem>>, vector<1x1x1x8xf32>
    %150 = vector.shape_cast %149 : vector<1x1x1x8xf32> to vector<1x8xf32>
    %151 = vector.broadcast %150 : vector<1x8xf32> to vector<6x8xf32>
    %152 = arith.addf %148, %151 : vector<6x8xf32>
    %153 = arith.truncf %138 : vector<6x8xf32> to vector<6x8xbf16>
    %154 = arith.truncf %145 : vector<6x8xf32> to vector<6x8xbf16>
    %cst_134 = arith.constant dense<0.000000e+00> : vector<6x6xf32>
    %155 = tpu.matmul %153, %154, %cst_134 {dimension_numbers = #tpu.dot_dimension_numbers<[1], [1], [0], [0], [0, 0, 1, 0], [], []>} : vector<6x8xbf16>, vector<6x8xbf16>, vector<6x6xf32> -> vector<6x6xf32>
    %cst_135 = arith.constant dense<0xFF800000> : vector<6xf32>
    %156 = vector.multi_reduction <maximumf>, %155, %cst_135 [1] : vector<6x6xf32> to vector<6xf32>
    %157 = vector.shape_cast %156 : vector<6xf32> to vector<6x1xf32>
    %158 = vector.broadcast %157 : vector<6x1xf32> to vector<6x6xf32>
    %159 = arith.subf %155, %158 : vector<6x6xf32>
    %160 = math.exp %159 : vector<6x6xf32>
    %cst_136 = arith.constant dense<0.000000e+00> : vector<6xf32>
    %161 = vector.multi_reduction <add>, %160, %cst_136 [1] : vector<6x6xf32> to vector<6xf32>
    %162 = vector.shape_cast %161 : vector<6xf32> to vector<6x1xf32>
    %163 = tpu.reciprocal %162 {approx = true} : vector<6x1xf32> -> vector<6x1xf32>
    %164 = vector.broadcast %163 : vector<6x1xf32> to vector<6x6xf32>
    %165 = arith.mulf %160, %164 : vector<6x6xf32>
    %166 = arith.truncf %165 : vector<6x6xf32> to vector<6x6xbf16>
    %167 = arith.truncf %152 : vector<6x8xf32> to vector<6x8xbf16>
    %cst_137 = arith.constant dense<0.000000e+00> : vector<6x8xf32>
    %168 = tpu.matmul %166, %167, %cst_137 {dimension_numbers = #tpu.dot_dimension_numbers<[1], [0], [0], [1], [0, 0, 1, 1], [], []>} : vector<6x6xbf16>, vector<6x8xbf16>, vector<6x8xf32> -> vector<6x8xf32>
    %169 = arith.truncf %168 : vector<6x8xf32> to vector<6x8xbf16>
    %c0_138 = arith.constant 0 : index
    %c3_139 = arith.constant 3 : index
    %c0_140 = arith.constant 0 : index
    %c0_141 = arith.constant 0 : index
    %170 = vector.load %arg18[%c0_138, %c3_139, %c0_140, %c0_141] : memref<1x4x8x32xbf16, #tpu.memory_space<vmem>>, vector<1x1x8x32xbf16>
    %171 = vector.shape_cast %170 : vector<1x1x8x32xbf16> to vector<8x32xbf16>
    %cst_142 = arith.constant dense<0.000000e+00> : vector<6x32xf32>
    %172 = tpu.matmul %169, %171, %cst_142 {dimension_numbers = #tpu.dot_dimension_numbers<[1], [0], [0], [1], [0, 0, 1, 1], [], []>} : vector<6x8xbf16>, vector<8x32xbf16>, vector<6x32xf32> -> vector<6x32xf32>
    %173 = arith.addf %131, %172 : vector<6x32xf32>
    %c0_143 = arith.constant 0 : index
    %c0_144 = arith.constant 0 : index
    %c0_145 = arith.constant 0 : index
    %174 = vector.load %arg19[%c0_143, %c0_144, %c0_145] : memref<1x1x32xf32, #tpu.memory_space<vmem>>, vector<1x1x32xf32>
    %175 = vector.shape_cast %174 : vector<1x1x32xf32> to vector<1x32xf32>
    %176 = vector.broadcast %175 : vector<1x32xf32> to vector<6x32xf32>
    %177 = arith.addf %173, %176 : vector<6x32xf32>
    %178 = arith.addf %3, %177 : vector<6x32xf32>
    %c0_146 = arith.constant 0 : index
    %c0_147 = arith.constant 0 : index
    %c0_148 = arith.constant 0 : index
    %179 = vector.load %arg20[%c0_146, %c0_147, %c0_148] : memref<1x1x32xf32, #tpu.memory_space<vmem>>, vector<1x1x32xf32>
    %180 = vector.shape_cast %179 : vector<1x1x32xf32> to vector<1x32xf32>
    %c0_149 = arith.constant 0 : index
    %c0_150 = arith.constant 0 : index
    %c0_151 = arith.constant 0 : index
    %181 = vector.load %arg21[%c0_149, %c0_150, %c0_151] : memref<1x1x32xf32, #tpu.memory_space<vmem>>, vector<1x1x32xf32>
    %182 = vector.shape_cast %181 : vector<1x1x32xf32> to vector<1x32xf32>
    %cst_152 = arith.constant dense<0.000000e+00> : vector<6xf32>
    %183 = vector.multi_reduction <add>, %178, %cst_152 [1] : vector<6x32xf32> to vector<6xf32>
    %184 = vector.shape_cast %183 : vector<6xf32> to vector<6x1xf32>
    %cst_153 = arith.constant 3.200000e+01 : f32
    %185 = vector.broadcast %cst_153 : f32 to vector<6x1xf32>
    %186 = arith.divf %184, %185 : vector<6x1xf32>
    %187 = vector.broadcast %186 : vector<6x1xf32> to vector<6x32xf32>
    %188 = arith.subf %178, %187 : vector<6x32xf32>
    %189 = arith.mulf %188, %188 : vector<6x32xf32>
    %cst_154 = arith.constant dense<0.000000e+00> : vector<6xf32>
    %190 = vector.multi_reduction <add>, %189, %cst_154 [1] : vector<6x32xf32> to vector<6xf32>
    %191 = vector.shape_cast %190 : vector<6xf32> to vector<6x1xf32>
    %cst_155 = arith.constant 3.200000e+01 : f32
    %192 = vector.broadcast %cst_155 : f32 to vector<6x1xf32>
    %193 = arith.divf %191, %192 : vector<6x1xf32>
    %cst_156 = arith.constant 9.99999974E-6 : f32
    %194 = vector.broadcast %cst_156 : f32 to vector<6x1xf32>
    %195 = arith.addf %193, %194 : vector<6x1xf32>
    %196 = math.rsqrt %195 : vector<6x1xf32>
    %197 = vector.broadcast %196 : vector<6x1xf32> to vector<6x32xf32>
    %198 = arith.mulf %188, %197 : vector<6x32xf32>
    %199 = vector.broadcast %180 : vector<1x32xf32> to vector<6x32xf32>
    %200 = arith.mulf %198, %199 : vector<6x32xf32>
    %201 = vector.broadcast %182 : vector<1x32xf32> to vector<6x32xf32>
    %202 = arith.addf %200, %201 : vector<6x32xf32>
    %203 = arith.truncf %202 : vector<6x32xf32> to vector<6x32xbf16>
    %c0_157 = arith.constant 0 : index
    %c0_158 = arith.constant 0 : index
    %c0_159 = arith.constant 0 : index
    %204 = vector.load %arg22[%c0_157, %c0_158, %c0_159] : memref<1x32x64xbf16, #tpu.memory_space<vmem>>, vector<1x32x64xbf16>
    %205 = vector.shape_cast %204 : vector<1x32x64xbf16> to vector<32x64xbf16>
    %cst_160 = arith.constant dense<0.000000e+00> : vector<6x64xf32>
    %206 = tpu.matmul %203, %205, %cst_160 {dimension_numbers = #tpu.dot_dimension_numbers<[1], [0], [0], [1], [0, 0, 1, 1], [], []>} : vector<6x32xbf16>, vector<32x64xbf16>, vector<6x64xf32> -> vector<6x64xf32>
    %c0_161 = arith.constant 0 : index
    %c0_162 = arith.constant 0 : index
    %c0_163 = arith.constant 0 : index
    %207 = vector.load %arg23[%c0_161, %c0_162, %c0_163] : memref<1x1x64xf32, #tpu.memory_space<vmem>>, vector<1x1x64xf32>
    %208 = vector.shape_cast %207 : vector<1x1x64xf32> to vector<1x64xf32>
    %209 = vector.broadcast %208 : vector<1x64xf32> to vector<6x64xf32>
    %210 = arith.addf %206, %209 : vector<6x64xf32>
    %cst_164 = arith.constant 5.000000e-01 : f32
    %211 = vector.broadcast %cst_164 : f32 to vector<6x64xf32>
    %212 = arith.mulf %211, %210 : vector<6x64xf32>
    %cst_165 = arith.constant 0.707106769 : f32
    %213 = vector.broadcast %cst_165 : f32 to vector<6x64xf32>
    %214 = arith.mulf %210, %213 : vector<6x64xf32>
    %215 = math.erf %214 : vector<6x64xf32>
    %cst_166 = arith.constant 1.000000e+00 : f32
    %216 = vector.broadcast %cst_166 : f32 to vector<6x64xf32>
    %217 = arith.addf %216, %215 : vector<6x64xf32>
    %218 = arith.mulf %212, %217 : vector<6x64xf32>
    %219 = arith.truncf %218 : vector<6x64xf32> to vector<6x64xbf16>
    %c0_167 = arith.constant 0 : index
    %c0_168 = arith.constant 0 : index
    %c0_169 = arith.constant 0 : index
    %220 = vector.load %arg24[%c0_167, %c0_168, %c0_169] : memref<1x64x32xbf16, #tpu.memory_space<vmem>>, vector<1x64x32xbf16>
    %221 = vector.shape_cast %220 : vector<1x64x32xbf16> to vector<64x32xbf16>
    %cst_170 = arith.constant dense<0.000000e+00> : vector<6x32xf32>
    %222 = tpu.matmul %219, %221, %cst_170 {dimension_numbers = #tpu.dot_dimension_numbers<[1], [0], [0], [1], [0, 0, 1, 1], [], []>} : vector<6x64xbf16>, vector<64x32xbf16>, vector<6x32xf32> -> vector<6x32xf32>
    %c0_171 = arith.constant 0 : index
    %c0_172 = arith.constant 0 : index
    %c0_173 = arith.constant 0 : index
    %223 = vector.load %arg25[%c0_171, %c0_172, %c0_173] : memref<1x1x32xf32, #tpu.memory_space<vmem>>, vector<1x1x32xf32>
    %224 = vector.shape_cast %223 : vector<1x1x32xf32> to vector<1x32xf32>
    %225 = vector.broadcast %224 : vector<1x32xf32> to vector<6x32xf32>
    %226 = arith.addf %222, %225 : vector<6x32xf32>
    %227 = arith.addf %202, %226 : vector<6x32xf32>
    %c0_174 = arith.constant 0 : index
    %c0_175 = arith.constant 0 : index
    %c0_176 = arith.constant 0 : index
    %228 = vector.load %arg26[%c0_174, %c0_175, %c0_176] : memref<1x1x32xf32, #tpu.memory_space<vmem>>, vector<1x1x32xf32>
    %229 = vector.shape_cast %228 : vector<1x1x32xf32> to vector<1x32xf32>
    %c0_177 = arith.constant 0 : index
    %c0_178 = arith.constant 0 : index
    %c0_179 = arith.constant 0 : index
    %230 = vector.load %arg27[%c0_177, %c0_178, %c0_179] : memref<1x1x32xf32, #tpu.memory_space<vmem>>, vector<1x1x32xf32>
    %231 = vector.shape_cast %230 : vector<1x1x32xf32> to vector<1x32xf32>
    %cst_180 = arith.constant dense<0.000000e+00> : vector<6xf32>
    %232 = vector.multi_reduction <add>, %227, %cst_180 [1] : vector<6x32xf32> to vector<6xf32>
    %233 = vector.shape_cast %232 : vector<6xf32> to vector<6x1xf32>
    %cst_181 = arith.constant 3.200000e+01 : f32
    %234 = vector.broadcast %cst_181 : f32 to vector<6x1xf32>
    %235 = arith.divf %233, %234 : vector<6x1xf32>
    %236 = vector.broadcast %235 : vector<6x1xf32> to vector<6x32xf32>
    %237 = arith.subf %227, %236 : vector<6x32xf32>
    %238 = arith.mulf %237, %237 : vector<6x32xf32>
    %cst_182 = arith.constant dense<0.000000e+00> : vector<6xf32>
    %239 = vector.multi_reduction <add>, %238, %cst_182 [1] : vector<6x32xf32> to vector<6xf32>
    %240 = vector.shape_cast %239 : vector<6xf32> to vector<6x1xf32>
    %cst_183 = arith.constant 3.200000e+01 : f32
    %241 = vector.broadcast %cst_183 : f32 to vector<6x1xf32>
    %242 = arith.divf %240, %241 : vector<6x1xf32>
    %cst_184 = arith.constant 9.99999974E-6 : f32
    %243 = vector.broadcast %cst_184 : f32 to vector<6x1xf32>
    %244 = arith.addf %242, %243 : vector<6x1xf32>
    %245 = math.rsqrt %244 : vector<6x1xf32>
    %246 = vector.broadcast %245 : vector<6x1xf32> to vector<6x32xf32>
    %247 = arith.mulf %237, %246 : vector<6x32xf32>
    %248 = vector.broadcast %229 : vector<1x32xf32> to vector<6x32xf32>
    %249 = arith.mulf %247, %248 : vector<6x32xf32>
    %250 = vector.broadcast %231 : vector<1x32xf32> to vector<6x32xf32>
    %251 = arith.addf %249, %250 : vector<6x32xf32>
    %c0_185 = arith.constant 0 : index
    %c0_186 = arith.constant 0 : index
    %252 = vector.load %arg29[%c0_185, %c0_186] : memref<6x32xf32, #tpu.memory_space<vmem>>, vector<6x32xf32>
    tpu.vector_store %arg29[%c0_185, %c0_186], %251 {strides = array<i32>} : memref<6x32xf32, #tpu.memory_space<vmem>>, vector<6x32xf32>,
    %c1_i32 = arith.constant 1 : i32
    %253 = arith.cmpi eq, %arg1, %c1_i32 : i32
    %254 = arith.extui %253 : i1 to i32
    %c0_i32_187 = arith.constant 0 : i32
    %255 = arith.cmpi ne, %254, %c0_i32_187 : i32
    scf.if %255 {
      %256 = vector.extract_strided_slice %251 {offsets = [0, 0], sizes = [1, 32], strides = [1, 1]} : vector<6x32xf32> to vector<1x32xf32>
      %c0_188 = arith.constant 0 : index
      %c0_189 = arith.constant 0 : index
      %c0_190 = arith.constant 0 : index
      %257 = vector.load %arg28[%c0_188, %c0_189, %c0_190] : memref<1x1x32xf32, #tpu.memory_space<vmem>>, vector<1x1x32xf32>
      %258 = vector.shape_cast %257 : vector<1x1x32xf32> to vector<1x32xf32>
      %259 = vector.shape_cast %256 : vector<1x32xf32> to vector<1x1x32xf32>
      tpu.vector_store %arg28[%c0_188, %c0_189, %c0_190], %259 {strides = array<i32>} : memref<1x1x32xf32, #tpu.memory_space<vmem>>, vector<1x1x32xf32>,
    } else {
    }
    return
  }
  func.func @transform_0(%arg0: i32, %arg1: i32) -> (i32, i32, i32) {
    %c0_i32 = arith.constant 0 : i32
    %c0_i32_0 = arith.constant 0 : i32
    %c0_i32_1 = arith.constant 0 : i32
    return %arg0, %c0_i32, %c0_i32_0 : i32, i32, i32
  }
  func.func @transform_1(%arg0: i32, %arg1: i32) -> (i32, i32, i32) {
    %c0_i32 = arith.constant 0 : i32
    %c0_i32_0 = arith.constant 0 : i32
    %c0_i32_1 = arith.constant 0 : i32
    return %arg0, %c0_i32, %c0_i32_0 : i32, i32, i32
  }
  func.func @transform_2(%arg0: i32, %arg1: i32) -> (i32, i32, i32) {
    %c0_i32 = arith.constant 0 : i32
    %c0_i32_0 = arith.constant 0 : i32
    %c0_i32_1 = arith.constant 0 : i32
    return %arg0, %c0_i32, %c0_i32_0 : i32, i32, i32
  }
  func.func @transform_3(%arg0: i32, %arg1: i32) -> (i32, i32) {
    %c0_i32 = arith.constant 0 : i32
    %c0_i32_0 = arith.constant 0 : i32
    %c0_i32_1 = arith.constant 0 : i32
    return %c0_i32, %c0_i32_0 : i32, i32
  }
  func.func @transform_4(%arg0: i32, %arg1: i32) -> (i32, i32) {
    %c0_i32 = arith.constant 0 : i32
    %c0_i32_0 = arith.constant 0 : i32
    %c0_i32_1 = arith.constant 0 : i32
    return %c0_i32, %c0_i32_0 : i32, i32
  }
  func.func @transform_5(%arg0: i32, %arg1: i32) -> (i32, i32) {
    %c0_i32 = arith.constant 0 : i32
    %c0_i32_0 = arith.constant 0 : i32
    %c0_i32_1 = arith.constant 0 : i32
    return %c0_i32, %c0_i32_0 : i32, i32
  }
  func.func @transform_6(%arg0: i32, %arg1: i32) -> (i32, i32) {
    %c0_i32 = arith.constant 0 : i32
    %c0_i32_0 = arith.constant 0 : i32
    %c0_i32_1 = arith.constant 0 : i32
    return %c0_i32, %c0_i32_0 : i32, i32
  }
  func.func @transform_7(%arg0: i32, %arg1: i32) -> (i32, i32) {
    %c0_i32 = arith.constant 0 : i32
    %c0_i32_0 = arith.constant 0 : i32
    %c0_i32_1 = arith.constant 0 : i32
    return %c0_i32, %c0_i32_0 : i32, i32
  }
  func.func @transform_8(%arg0: i32, %arg1: i32) -> (i32, i32) {
    %c0_i32 = arith.constant 0 : i32
    %c0_i32_0 = arith.constant 0 : i32
    %c0_i32_1 = arith.constant 0 : i32
    return %c0_i32, %c0_i32_0 : i32, i32
  }
  func.func @transform_9(%arg0: i32, %arg1: i32) -> (i32, i32) {
    %c0_i32 = arith.constant 0 : i32
    %c0_i32_0 = arith.constant 0 : i32
    %c0_i32_1 = arith.constant 0 : i32
    return %c0_i32, %c0_i32_0 : i32, i32
  }
  func.func @transform_10(%arg0: i32, %arg1: i32) -> (i32, i32, i32, i32) {
    %c0_i32 = arith.constant 0 : i32
    %c0_i32_0 = arith.constant 0 : i32
    %c0_i32_1 = arith.constant 0 : i32
    %c0_i32_2 = arith.constant 0 : i32
    return %arg1, %c0_i32, %c0_i32_0, %c0_i32_1 : i32, i32, i32, i32
  }
  func.func @transform_11(%arg0: i32, %arg1: i32) -> (i32, i32, i32, i32) {
    %c0_i32 = arith.constant 0 : i32
    %c0_i32_0 = arith.constant 0 : i32
    %c0_i32_1 = arith.constant 0 : i32
    %c0_i32_2 = arith.constant 0 : i32
    return %arg1, %c0_i32, %c0_i32_0, %c0_i32_1 : i32, i32, i32, i32
  }
  func.func @transform_12(%arg0: i32, %arg1: i32) -> (i32, i32, i32, i32) {
    %c0_i32 = arith.constant 0 : i32
    %c0_i32_0 = arith.constant 0 : i32
    %c0_i32_1 = arith.constant 0 : i32
    %c0_i32_2 = arith.constant 0 : i32
    return %arg1, %c0_i32, %c0_i32_0, %c0_i32_1 : i32, i32, i32, i32
  }
  func.func @transform_13(%arg0: i32, %arg1: i32) -> (i32, i32, i32, i32) {
    %c0_i32 = arith.constant 0 : i32
    %c0_i32_0 = arith.constant 0 : i32
    %c0_i32_1 = arith.constant 0 : i32
    %c0_i32_2 = arith.constant 0 : i32
    return %arg1, %c0_i32, %c0_i32_0, %c0_i32_1 : i32, i32, i32, i32
  }
  func.func @transform_14(%arg0: i32, %arg1: i32) -> (i32, i32, i32, i32) {
    %c0_i32 = arith.constant 0 : i32
    %c0_i32_0 = arith.constant 0 : i32
    %c0_i32_1 = arith.constant 0 : i32
    %c0_i32_2 = arith.constant 0 : i32
    return %arg1, %c0_i32, %c0_i32_0, %c0_i32_1 : i32, i32, i32, i32
  }
  func.func @transform_15(%arg0: i32, %arg1: i32) -> (i32, i32, i32, i32) {
    %c0_i32 = arith.constant 0 : i32
    %c0_i32_0 = arith.constant 0 : i32
    %c0_i32_1 = arith.constant 0 : i32
    %c0_i32_2 = arith.constant 0 : i32
    return %arg1, %c0_i32, %c0_i32_0, %c0_i32_1 : i32, i32, i32, i32
  }
  func.func @transform_16(%arg0: i32, %arg1: i32) -> (i32, i32, i32, i32) {
    %c0_i32 = arith.constant 0 : i32
    %c0_i32_0 = arith.constant 0 : i32
    %c0_i32_1 = arith.constant 0 : i32
    %c0_i32_2 = arith.constant 0 : i32
    return %arg1, %c0_i32, %c0_i32_0, %c0_i32_1 : i32, i32, i32, i32
  }
  func.func @transform_17(%arg0: i32, %arg1: i32) -> (i32, i32, i32) {
    %c0_i32 = arith.constant 0 : i32
    %c0_i32_0 = arith.constant 0 : i32
    %c0_i32_1 = arith.constant 0 : i32
    return %arg1, %c0_i32, %c0_i32_0 : i32, i32, i32
  }
  func.func @transform_18(%arg0: i32, %arg1: i32) -> (i32, i32, i32) {
    %c0_i32 = arith.constant 0 : i32
    %c0_i32_0 = arith.constant 0 : i32
    %c0_i32_1 = arith.constant 0 : i32
    return %arg1, %c0_i32, %c0_i32_0 : i32, i32, i32
  }
  func.func @transform_19(%arg0: i32, %arg1: i32) -> (i32, i32, i32) {
    %c0_i32 = arith.constant 0 : i32
    %c0_i32_0 = arith.constant 0 : i32
    %c0_i32_1 = arith.constant 0 : i32
    return %arg1, %c0_i32, %c0_i32_0 : i32, i32, i32
  }
  func.func @transform_20(%arg0: i32, %arg1: i32) -> (i32, i32, i32) {
    %c0_i32 = arith.constant 0 : i32
    %c0_i32_0 = arith.constant 0 : i32
    %c0_i32_1 = arith.constant 0 : i32
    return %arg1, %c0_i32, %c0_i32_0 : i32, i32, i32
  }
  func.func @transform_21(%arg0: i32, %arg1: i32) -> (i32, i32, i32) {
    %c0_i32 = arith.constant 0 : i32
    %c0_i32_0 = arith.constant 0 : i32
    %c0_i32_1 = arith.constant 0 : i32
    return %arg1, %c0_i32, %c0_i32_0 : i32, i32, i32
  }
  func.func @transform_22(%arg0: i32, %arg1: i32) -> (i32, i32, i32) {
    %c0_i32 = arith.constant 0 : i32
    %c0_i32_0 = arith.constant 0 : i32
    %c0_i32_1 = arith.constant 0 : i32
    return %arg1, %c0_i32, %c0_i32_0 : i32, i32, i32
  }
  func.func @transform_23(%arg0: i32, %arg1: i32) -> (i32, i32, i32) {
    %c0_i32 = arith.constant 0 : i32
    %c0_i32_0 = arith.constant 0 : i32
    %c0_i32_1 = arith.constant 0 : i32
    return %arg1, %c0_i32, %c0_i32_0 : i32, i32, i32
  }
  func.func @transform_24(%arg0: i32, %arg1: i32) -> (i32, i32, i32) {
    %c0_i32 = arith.constant 0 : i32
    %c0_i32_0 = arith.constant 0 : i32
    %c0_i32_1 = arith.constant 0 : i32
    return %arg1, %c0_i32, %c0_i32_0 : i32, i32, i32
  }
  func.func @transform_25(%arg0: i32, %arg1: i32) -> (i32, i32, i32) {
    %c0_i32 = arith.constant 0 : i32
    %c0_i32_0 = arith.constant 0 : i32
    %c0_i32_1 = arith.constant 0 : i32
    return %arg1, %c0_i32, %c0_i32_0 : i32, i32, i32
  }
  func.func @transform_26(%arg0: i32, %arg1: i32) -> (i32, i32, i32) {
    %c0_i32 = arith.constant 0 : i32
    %c0_i32_0 = arith.constant 0 : i32
    %c0_i32_1 = arith.constant 0 : i32
    return %arg0, %c0_i32, %c0_i32_0 : i32, i32, i32
  }
}

</mosaic_0001>

<bundles_post_ra>
// kernel: mld_denoiser_forward.1
= control target key start
LH: loop header
LB: loop body
LE: loop exit
PB: predicated region body
PF: predicated region fallthrough
CT: control target
= control target key end

     0   :  { %s3563_s0 = inlined_call_operand.vmem [shape: f32[2,1,48], index: 0, kind: input, shape index: {}]   ;;  %s3564_s1 = inlined_call_operand.vmem [shape: f32[2,1,32], index: 1, kind: input, shape index: {}]   ;;  %s3565_s2 = inlined_call_operand.vmem [shape: f32[2,4,48], index: 2, kind: input, shape index: {}]   ;;  %s3566_s3 = inlined_call_operand.vmem [shape: f32[6,32], index: 3, kind: input, shape index: {}]   ;;  %s3567_s4 = inlined_call_operand.vmem [shape: bf16[48,32], index: 4, kind: input, shape index: {}]   ;;  %s3568_s5 = inlined_call_operand.vmem [shape: f32[1,32], index: 5, kind: input, shape index: {}]   ;;  %s3569_s6 = inlined_call_operand.vmem [shape: bf16[32,32], index: 6, kind: input, shape index: {}]   ;;  %s3570_s7 = inlined_call_operand.vmem [shape: f32[1,32], index: 7, kind: input, shape index: {}]   ;;  %s3571_s8 = inlined_call_operand.vmem [shape: bf16[48,32], index: 8, kind: input, shape index: {}]   ;;  %s3572_s9 = inlined_call_operand.vmem [shape: f32[1,32], index: 9, kind: input, shape index: {}]   ;;  %s3573_s10 = inlined_call_operand.vmem [shape: bf16[2,4,32,8], index: 10, kind: input, shape index: {}]   ;;  %s3574_s11 = inlined_call_operand.vmem [shape: f32[2,4,1,8], index: 11, kind: input, shape index: {}]   ;;  %s3575_s12 = inlined_call_operand.vmem [shape: bf16[2,4,32,8], index: 12, kind: input, shape index: {}]   ;;  %s3576_s13 = inlined_call_operand.vmem [shape: f32[2,4,1,8], index: 13, kind: input, shape index: {}]   ;;  %s3577_s14 = inlined_call_operand.vmem [shape: bf16[2,4,32,8], index: 14, kind: input, shape index: {}]   ;;  %s3578_s15 = inlined_call_operand.vmem [shape: f32[2,4,1,8], index: 15, kind: input, shape index: {}]   ;;  %s3579_s16 = inlined_call_operand.vmem [shape: bf16[2,4,8,32], index: 16, kind: input, shape index: {}]   ;;  %s3580_s17 = inlined_call_operand.vmem [shape: f32[2,1,32], index: 17, kind: input, shape index: {}]   ;;  %s3581_s18 = inlined_call_operand.vmem [shape: f32[2,1,32], index: 18, kind: input, shape index: {}]   ;;  %s3582_s19 = inlined_call_operand.vmem [shape: f32[2,1,32], index: 19, kind: input, shape index: {}]   ;;  %s3583_s20 = inlined_call_operand.vmem [shape: bf16[2,32,64], index: 20, kind: input, shape index: {}]   ;;  %s3584_s21 = inlined_call_operand.vmem [shape: f32[2,1,64], index: 21, kind: input, shape index: {}]   ;;  %s3585_s22 = inlined_call_operand.vmem [shape: bf16[2,64,32], index: 22, kind: input, shape index: {}]   ;;  %s3586_s23 = inlined_call_operand.vmem [shape: f32[2,1,32], index: 23, kind: input, shape index: {}]   ;;  %s3587_s24 = inlined_call_operand.vmem [shape: f32[2,1,32], index: 24, kind: input, shape index: {}]   ;;  %s3588_s25 = inlined_call_operand.vmem [shape: f32[2,1,32], index: 25, kind: input, shape index: {}]   ;;  %s3589_s26 = inlined_call_operand.hbm [shape: f32[2,1,32], index: 26, kind: output, shape index: {}]  }
   0x1   :  { %3609 = sst [smem:[#allocation21_spill]] %s3563_s0 }
   0x2   :  { %3610 = sst [smem:[#allocation22_spill]] %s3564_s1 }
   0x3   :  { %3611 = sst [smem:[#allocation23_spill]] %s3565_s2 }
   0x4   :  { %3612 = sst [smem:[#allocation24_spill]] %s3566_s3 }
   0x5   :  { %3613 = sst [smem:[#allocation25_spill]] %s3567_s4 }
   0x6   :  { %3614 = sst [smem:[#allocation26_spill]] %s3568_s5 }
   0x7   :  { %3615 = sst [smem:[#allocation27_spill]] %s3569_s6 }
   0x8   :  { %3616 = sst [smem:[#allocation28_spill]] %s3570_s7 }
   0x9   :  { %3617 = sst [smem:[#allocation29_spill]] %s3571_s8 }
   0xa   :  { %3618 = sst [smem:[#allocation30_spill]] %s3572_s9 }
   0xb   :  { %3619 = sst [smem:[#allocation31_spill]] %s3573_s10 }
   0xc   :  { %3620 = sst [smem:[#allocation32_spill]] %s3574_s11 }
   0xd   :  { %3621 = sst [smem:[#allocation33_spill]] %s3575_s12 }
   0xe   :  { %3622 = sst [smem:[#allocation34_spill]] %s3576_s13 }
   0xf   :  { %3623 = sst [smem:[#allocation35_spill]] %s3577_s14 }
  0x10   :  { %3624 = sst [smem:[#allocation36_spill]] %s3578_s15 }
  0x11   :  { %3625 = sst [smem:[#allocation37_spill]] %s3579_s16 }
  0x12   :  { %3626 = sst [smem:[#allocation38_spill]] %s3581_s18 }
  0x13   :  { %3627 = sst [smem:[#allocation39_spill]] %s3582_s19 }
  0x14   :  { %3628 = sst [smem:[#allocation40_spill]] %s3583_s20 }
  0x15   :  { %3629 = sst [smem:[#allocation41_spill]] %s3585_s22 }
  0x16   :  { %3630 = sst [smem:[#allocation42_spill]] %s3586_s23 }
  0x17   :  { %3631 = sst [smem:[#allocation43_spill]] %s3587_s24 }
  0x18   :  { %3632 = sst [smem:[#allocation44_spill]] %s3588_s25 }
  0x19   :  { %3633 = sst [smem:[#allocation45_spill]] %s3589_s26 }
  0x1a   :  { %31 = vsyncpa [#allocation4], 0 }
  0x1b   :  { %33 = vsyncpa [#allocation4 + $0x1], 0  ;;  %s3128_s27 = smov 0   ;;  %s3130_s3 = smov 0  }
  0x1c   :  { %s3132_s7 = smov 0   ;;  %s3134_s28 = smov 0  }
  0x1d   :  { %s3136_s8 = smov 0   ;;  %s3138_s4 = smov 0  }
  0x1e   :  { %s3140_s29 = smov 0   ;;  %s3142_s0 = smov 0  }
  0x1f LB: > { %3634 = sst [smem:[#allocation6_spill]] %s2962_s27  ;;  %s2476_s9 = sadd.s32 4294967295, %s2990_s0   ;;  %s2990_s0 = sphi %s3142_s0, %s39_s0   ;;  %s2986_s29 = sphi %s3140_s29, %s3708_s29   ;;  %s2982_s4 = sphi %s3138_s4, %s3707_s4   ;;  %s2978_s8 = sphi %s3136_s8, %s3706_s8   ;;  %s2974_s28 = sphi %s3134_s28, %s3705_s28   ;;  %s2970_s7 = sphi %s3132_s7, %s3704_s7   ;;  %s2966_s3 = sphi %s3130_s3, %s3710_s3   ;;  %s2962_s27 = sphi %s3128_s27, %s3709_s27  }
  0x20   : > { %3635 = sst [smem:[#allocation7_spill]] %s2970_s7  ;;  %s2477_s30 = sadd.s32 4294967294, %s2990_s0  }
  0x21   : > { %3636 = sst [smem:[#allocation8_spill]] %s2974_s28  ;;  %s48_s2 = sadd.s32 1, %s2982_s4 }
  0x22   : > { %3637 = sst [smem:[#allocation9_spill]] %s2978_s8  ;;  %p49_p0 = scmp.ge.s32.totalorder %s48_s2, 2 }
  0x23   : > { %3638 = sst [smem:[#allocation10_spill]] %s2982_s4  ;;  %s51_s5 = sadd.s32 1, %s2986_s29 }
  0x24   : > { %3639 = sst [smem:[#allocation11_spill]] %s2986_s29  ;;  %p709_p1 = scmp.ne.s32.totalorder %s2970_s7, %s2966_s3 }
  0x25   : > { %3640 = sst [smem:[#allocation12_spill]] %s2990_s0  ;;  %p710_p2 = scmp.eq.s32.totalorder %s2476_s9, 3 }
  0x26   : > { %s3712_s2 = smov (%p49_p0, %s48_s2), 0  ;;  %s3714_s5 = smov (!%p49_p0, %s51_s5), %s2986_s29 }
  0x27   : > { %3641 = sst [smem:[#allocation13_spill]] %s3712_s2  ;;  %p3177_p3 = por %p710_p2, %p709_p1 }
  0x28   : > { %p715_p4 = scmp.ne.s32.totalorder %s2966_s3, %s2962_s27  ;;  %p53_p5 = scmp.ge.s32.totalorder %s3714_s5, 2 }
  0x29   : > { %s3642_s10 = scalar_select %p3177_p3, 1, 0 }
  0x2a   : > { %p716_p6 = scmp.eq.s32.totalorder %s2477_s30, 3  ;;  %p2480_p7 = scmp.ge.s32.totalorder %s2990_s0, 1 }
  0x2b   : > { %3643 = sst [smem:[#allocation14_spill]] %s3642_s10  ;;  %p885_p8 = scmp.lt.s32.totalorder %s2990_s0, 5 }
  0x2c   : > { %s3716_s5 = smov (%p53_p5, %s3714_s5), 0  ;;  %p3187_p9 = por %p716_p6, %p715_p4 }
  0x2d   : > { %3644 = sst [smem:[#allocation15_spill]] %s3716_s5  ;;  %p886_p10 = pnand %p2480_p7, %p885_p8 }
  0x2e   : > { %s3645_s6 = scalar_select %p3187_p9, 1, 0 }
  0x2f   : > { %s696_s1 = ssub.s32 %s2986_s29, %s3716_s5  ;;  %s699_s9 = sadd.s32 1, %s2970_s7 }
  0x30   : > { %3646 = sst [smem:[#allocation16_spill]] %s3645_s6  ;;  %p697_p11 = scmp.eq.s32.totalorder %s696_s1, 0 }
  0x31   : > { %889 = sbr.rel (%p886_p10) target bundleno = 3546 (0xdda), region = 124 }
  0x32   : > { %s3195_s2 = scalar_select %p697_p11, %s2970_s7, %s699_s9  }
  0x34   : > { %3647 = sst [smem:[#allocation17_spill]] %s3195_s2 }
  0x36   : > { %p1022_p12 = scmp.lt.s32.totalorder %s2978_s8, 1  ;;  %p1032_p13 = scmp.lt.s32.totalorder %s2974_s28, 1 }
  0x37   : > { %s3651_s24 = sld [smem:[#allocation31_spill]] }
  0x38   : > { %s3201_s4 = scalar_select %p1022_p12, %s2978_s8, 1 }
  0x39   : > { %s3204_s6 = scalar_select %p1032_p13, %s2974_s28, 1 }
  0x3a   : > { %s2481_s0 = sshll.u32 %s3201_s4, 2  ;;  %s3650_s28 = sld [smem:[#allocation23_spill]] }
  0x3b   : > { %s2732_s10 = sshll.u32 %s3204_s6, 6  ;;  %s2484_s9 = sshll.u32 %s3204_s6, 2 }
  0x3c   : > { %s3652_s12 = sld [smem:[#allocation33_spill]]  ;;  %s2735_s27 = sshll.u32 %s3204_s6, 4 }
  0x3d   : > { %s3224_s23 = scalar_lea.vmem %s3651_s24, %s2732_s10  ;;  %s3654_s11 = sld [smem:[#allocation32_spill]] }
  0x3e   : > { %s3656_s13 = sld [smem:[#allocation34_spill]] }
  0x3f   : > { %s3658_s14 = sld [smem:[#allocation35_spill]] }
  0x40   : > { %s3219_s25 = scalar_lea.vmem %s3650_s28, %s2481_s0  ;;  %s3659_s15 = sld [smem:[#allocation36_spill]] }
  0x41   : > { %s3660_s16 = sld [smem:[#allocation37_spill]] }
  0x42   : > { %s3230_s7 = scalar_lea.vmem %s3652_s12, %s2732_s10  ;;  %s3663_s20 = sld [smem:[#allocation40_spill]] }
  0x43   : > { %3653 = sst [smem:[#allocation18_spill]] %s3230_s7  ;;  %s3235_s26 = scalar_lea.vmem %s3654_s11, %s2484_s9 }
  0x44   : > { %3655 = sst [smem:[#allocation19_spill]] %s3235_s26  ;;  %s3240_s24 = scalar_lea.vmem %s3656_s13, %s2484_s9 }
  0x45   : > { %3657 = sst [smem:[#allocation20_spill]] %s3240_s24  ;;  %s3245_s1 = scalar_lea.vmem %s3658_s14, %s2732_s10 }
  0x46   : > { %s3250_s12 = scalar_lea.vmem %s3659_s15, %s2484_s9  ;;  %s2737_s7 = sshll.u32 %s3204_s6, 5 }
  0x47   : > { %s3260_s8 = scalar_lea.vmem %s3660_s16, %s2735_s27  ;;  %s3664_s22 = sld [smem:[#allocation41_spill]] }
  0x48   : > { %s3273_s14 = scalar_lea.vmem %s3663_s20, %s2735_s27  ;;  %s3665_s10 = sld [smem:[#allocation42_spill]] }
  0x49   : > { %s3666_s19 = sld [smem:[#allocation43_spill]]  ;;  %s3668_s11 = sand.u32 1, %s2966_s3  }
  0x4a   : > { %s3667_s20 = sld [smem:[#allocation44_spill]]  ;;  %s3299_s30 = scalar_lea.vmem [#allocation3], %s3668_s11 }
  0x4b   : > { %s3669_s26 = sld [smem:[#allocation8_spill]] }
  0x4d   : > { %s3283_s16 = scalar_lea.vmem %s3664_s22, %s2737_s7 }
  0x4e   : > { %s1088_s0 = scalar_lea.vmem %s3665_s10, %s3204_s6 }
  0x4f   : > { %s1091_s9 = scalar_lea.vmem %s3666_s19, %s3204_s6 }
  0x50   : > { %s1094_s18 = scalar_lea.vmem %s3667_s20, %s3204_s6 }
  0x51   : > { %p2497_p0 = scmp.ne.s32.totalorder %s3669_s26, 0 }
  0x52   : > { %s3670_s28 = sld [smem:[#allocation25_spill]] (!%p2497_p0) }
  0x53   : > { %1099 = sbr.rel (%p2497_p0) target bundleno = 395 (0x18b), region = 128  ;;  %s3672_s26 = sld [smem:[#allocation21_spill]] (!%p2497_p0) }
  0x54   : > { %s3674_s11 = sld [smem:[#allocation29_spill]] (!%p2497_p0) }
  0x55   : > { %s3675_s20 = sld [smem:[#allocation27_spill]] (!%p2497_p0) }
  0x56   : > { %s3677_s15 = sld [smem:[#allocation30_spill]] (!%p2497_p0) }
  0x57   : > { %s3678_s10 = sld [smem:[#allocation28_spill]] (!%p2497_p0) }
  0x58   : > { %s3671_s22 = smov %s3670_s28  ;;  %v2740_v0 = vld [vmem:[%s3670_s28 + $0x10] sm:$0xff]  ;;  %vm1127_vm0 = vcmask 392192   ;;  %v1199_v8 = vld [vmem:[%s3219_s25] sm:$0xf]  ;;  %vm1182_vm5 = vcmask 261120   ;;  %s3679_s13 = sld [smem:[#allocation22_spill]] }
  0x59   : > { %1136 = vmatpush.bf16.msra.mxu0 %v2740_v0  ;;  %v2739_v1 = vld [vmem:[%s3671_s22 + $0x8] sm:$0xff]  ;;  %v2738_v2 = vld [vmem:[%s3671_s22] sm:$0xff]  ;;  %s3673_s5 = scalar_lea.vmem %s3672_s26, %s3201_s4  ;;  %v1200_v9 = vmax.f32 %v1199_v8, 0.0  ;;  %s3676_s26 = sld [smem:[#allocation26_spill]]  ;;  %vm1253_vm6 = vcmask 1040384   ;;  %vm1255_vm7 = vcmask 1041408  }
  0x5a   : > { %v1100_v3 = vld [vmem:[%s3673_s5] sm:$0x1]  ;;  %v2745_v5 = vld [vmem:[%s3674_s11 + $0x10] sm:$0xff]  ;;  %v2744_v6 = vld [vmem:[%s3674_s11 + $0x8] sm:$0xff]  ;;  %s3681_s27 = sld [smem:[#allocation24_spill]]  ;;  %vm1259_vm8 = vcmask 259072  }
  0x5b   : > { %v1101_v4 = vpack.c.bf16 %v1100_v3, %v1100_v3  ;;  %1238 = vmatpush.bf16.msra.mxu2 %v2745_v5  ;;  %v2743_v7 = vld [vmem:[%s3674_s11] sm:$0xff]  ;;  %v1201_v10 = vpack.c.bf16 %v1200_v9, %v1200_v9  ;;  %v2742_v11 = vld [vmem:[%s3675_s20 + $0x8] sm:$0xff] }
  0x5c   : > { %1192 = vmatpush.bf16.msra.mxu1 %v2742_v11  ;;  %v2741_v13 = vld [vmem:[%s3675_s20] sm:$0xff] }
  0x5d   : > { %1137 = vmatpush.bf16.msra.mxu0 %v2739_v1  ;;  %v2848_v34 = vld [vmem:[%s3677_s15] ss:$0 sm:$0xff] }
  0x5e   : > { %v1169_v36 = vld [vmem:[%s3678_s10] sm:$0x1]  ;;  %s3680_s24 = scalar_lea.vmem %s3679_s13, %s3201_s4 }
  0x5f   : > { %1239 = vmatpush.bf16.msra.mxu2 %v2744_v6  ;;  %v1108_v12 = vld [vmem:[%s3676_s26] sm:$0x1] }
  0x60   : > { %1193 = vmatpush.bf16.msra.mxu1 %v2741_v13  ;;  %v1246_v40 = vld [vmem:[%s3680_s24] sm:$0x1] }
  0x61   : > { %1138 = vmatpush.bf16.msra.mxu0 %v2738_v2  ;;  %v1257_v42 = vld [vmem:[%s3681_s27] sm:$0x3f] }
  0x63   : > { %1240 = vmatpush.bf16.msra.mxu2 %v2743_v7 }
  0x64   : > { %2510 = vmatmul.msk.bf16.vlgmr.msra.gmra.mxu0 %vm1127_vm0, %v1101_v4 }
  0x66   : > { %2533 = vmatmul.msk.bf16.vlgmr.msra.gmra.mxu2 %vm1127_vm0, %v1201_v10 }
  0xe1   : > { %v1140_v14 = vpop.f32.mrf.mxu0 }
  0xe2   : > { %v1141_v15 = vadd.f32 %v1140_v14, %v1108_v12 }
  0xe4   : > { %v2511_v16 = vmul.f32 -1.442695, %v1141_v15 }
  0xe6   : > { %2849 = vpow2.f32 %v2511_v16 }
  0xe9   : > { %v1142_v17 = vpop.f32.mrf.mxu0  ;;  %v1242_v32 = vpop.f32.mrf.mxu2 }
  0xea   : > { %v1243_v35 = vadd.f32 %v2848_v34, %v1242_v32 }
  0xec   : > { %v2850_v18 = vpop.eup %2849  ;;  %v1251_v39 = vrot.slane %v1243_v35, 6 }
  0xed   : > { %v1147_v19 = vadd.f32 1.0, %v2850_v18 }
  0xef   : > { %2851 = vrcp.f32 %v1147_v19  ;;  %v1159_v23 = vand.u32 2147483648, %v1147_v19  ;;  %v1157_v25 = vand.u32 2147483647, %v1147_v19  ;;  %vm1153_vm2 = vweird.f32 %v1147_v19 }
  0xf1   : > { %v1160_v27 = vor.u32 1.1754944e-38, %v1159_v23  ;;  %vm1158_vm4 = vcmp.eq.f32.partialorder %v1157_v25, 8.507059e+37  ;;  %v1244_v33 = vpop.f32.mrf.mxu2 }
  0xf5   : > { %v2852_v20 = vpop.eup %2851 }
  0xf6   : > { %v1149_v21 = vmul.f32 %v2852_v20, %v1147_v19  ;;  %vm1154_vm1 = vweird.f32 %v2852_v20 }
  0xf7   : > { %vm1155_vm3 = vmor %vm1153_vm2, %vm1154_vm1 }
  0xf8   : > { %v1150_v22 = vsub.f32 1.0, %v1149_v21 }
  0xfa   : > { %v1151_v24 = vmul.f32 %v2852_v20, %v1150_v22 }
  0xfc   : > { %v1152_v26 = vadd.f32 %v2852_v20, %v1151_v24 }
  0xfe   : > { %v1156_v28 = vsel %vm1155_vm3, %v2852_v20, %v1152_v26 }
  0xff   : > { %v1161_v29 = vsel %vm1158_vm4, %v1160_v27, %v1156_v28 }
 0x100   : > { %v1163_v30 = vmul.f32 %v1161_v29, %v1141_v15 }
 0x102   : > { %v1164_v31 = vpack.c.bf16 %v1163_v30, %v1163_v30 }
 0x104   : > { %2520 = vmatmul.msk.bf16.vlgmr.msra.gmra.mxu1 %vm1182_vm5, %v1164_v31 }
 0x181   : > { %v1195_v37 = vpop.f32.mrf.mxu1 }
 0x182   : > { %v1196_v38 = vadd.f32 %v1195_v37, %v1169_v36 }
 0x184   : > { %v1248_v41 = vrot.slane %v1196_v38, 7 }
 0x186   : > { %v1254_v43 = vsel %vm1253_vm6, %v1246_v40, %v1248_v41 }
 0x187   : > { %v1256_v44 = vsel %vm1255_vm7, %v1254_v43, %v1251_v39 }
 0x188   : > { %v1258_v45 = vadd.f32 %v1257_v42, %v1256_v44 }
 0x189   : > { %v1197_v46 = vpop.f32.mrf.mxu1 }
 0x18a   : > { %1260 = vst.msk [vmem:[#allocation2] sm:$0x3f] %vm1259_vm8, %v1258_v45 }
 0x18b PF: > { %s3682_s25 = sld [smem:[#allocation18_spill]]  ;;  %v2747_v47 = vld [vmem:[%s3224_s23 + $0x8] sm:$0xff]  ;;  %v2746_v49 = vld [vmem:[%s3224_s23] sm:$0xff]  ;;  %vm1283_vm9 = vcmask 261120   ;;  %vm1368_vm10 = vcmask 64512   ;;  %vm1388_vm11 = vcmask 46080   ;;  %s3690_s26 = scalar_lea.vmem %s3584_s21, %s3204_s6 }
 0x18c   : > { %s3683_s4 = sld [smem:[#allocation20_spill]]  ;;  %1293 = vmatpush.bf16.msra.mxu0 %v2747_v47  ;;  %v2751_v0 = vld [vmem:[%s3245_s1 + $0x8] sm:$0xff]  ;;  %v2750_v1 = vld [vmem:[%s3245_s1] sm:$0xff]  ;;  %v2753_v7 = vld [vmem:[%s3224_s23 + $0x18] sm:$0xff]  ;;  %vm1406_vm12 = vcmask 1042432   ;;  %vm1402_vm13 = vcmask 48128  }
 0x18d   : > { %s3684_s2 = sld [smem:[#allocation19_spill]]  ;;  %1359 = vmatpush.bf16.msra.mxu2 %v2751_v0  ;;  %v2752_v8 = vld [vmem:[%s3224_s23 + $0x10] sm:$0xff]  ;;  %v2855_v16 = vld [vmem:[%s3250_s12] ss:$0 sm:$0xff]  ;;  %v2757_v28 = vld [vmem:[%s3245_s1 + $0x18] sm:$0xff]  ;;  %vm1589_vm14 = vcmask 1043456  }
 0x18e   : > { %v2756_v29 = vld [vmem:[%s3245_s1 + $0x10] sm:$0xff]  ;;  %v1424_v37 = vld [vmem:[%s3260_s8] sm:$0xf]  ;;  %vm1995_vm15 = vcmask 259072   ;;  %s3686_s7 = sld [smem:[#allocation38_spill]]  ;;  %vm2151_vm8 = vcmask 523264  }
 0x18f   : > { %v1610_v38 = vsel %vm1589_vm14, %v1424_v37, 0  ;;  %v2858_v39 = vld [vmem:[%s3250_s12 + $0x1] ss:$0 sm:$0xff]  ;;  %s3688_s29 = sld [smem:[#allocation39_spill]] }
 0x190   : > { %1294 = vmatpush.bf16.msra.mxu0 %v2746_v49 }
 0x191   : > { %v2749_v48 = vld [vmem:[%s3682_s25 + $0x8] sm:$0xff]  ;;  %v2748_v50 = vld [vmem:[%s3682_s25] sm:$0xff]  ;;  %v2755_v2 = vld [vmem:[%s3682_s25 + $0x18] sm:$0xff]  ;;  %1360 = vmatpush.bf16.msra.mxu2 %v2750_v1 }
 0x192   : > { %1326 = vmatpush.bf16.msra.mxu1 %v2749_v48  ;;  %v3353_v51 = vld [vmem:[#allocation2] sm:$0x3f]  ;;  %v2754_v6 = vld [vmem:[%s3682_s25 + $0x10] sm:$0xff] }
 0x193   : > { %v3357_v52 = vpack.c.bf16 %v3353_v51, %v3353_v51  ;;  %v2854_v53 = vld [vmem:[%s3683_s4] ss:$0 sm:$0xff]  ;;  %v2856_v21 = vld [vmem:[%s3683_s4 + $0x1] ss:$0 sm:$0xff] }
 0x194   : > { %v2853_v56 = vld [vmem:[%s3684_s2] ss:$0 sm:$0xff]  ;;  %v2857_v34 = vld [vmem:[%s3684_s2 + $0x1] ss:$0 sm:$0xff] }
 0x195   : > { %2542 = vmatmul.msk.bf16.vlgmr.msra.gmra.mxu0 %vm1283_vm9, %v3357_v52  ;;  %1488 = vmatpush.bf16.msrb.mxu2 %v2755_v2  ;;  %s3689_s19 = scalar_lea.vmem %s3688_s29, %s3204_s6 }
 0x196   : > { %1327 = vmatpush.bf16.msra.mxu1 %v2748_v50  ;;  %2560 = vmatmul.msk.bf16.vlgmr.msra.gmra.mxu2 %vm1283_vm9, %v3357_v52 }
 0x199   : > { %2551 = vmatmul.msk.bf16.vlgmr.msra.gmra.mxu1 %vm1283_vm9, %v3357_v52  ;;  %1489 = vmatpush.bf16.msrb.mxu2 %v2754_v6 }
 0x19a   : > { %1453 = vmatpush.bf16.msrb.mxu1 %v2753_v7 }
 0x19e   : > { %1454 = vmatpush.bf16.msrb.mxu1 %v2752_v8 }
 0x1a6   : > { %2590 = vmatmul.msk.bf16.vlgmr.msrb.gmra.mxu2 %vm1283_vm9, %v3357_v52 }
 0x1a9   : > { %2576 = vmatmul.msk.bf16.vlgmr.msrb.gmra.mxu1 %vm1283_vm9, %v3357_v52 }
 0x212   : > { %v1296_v54 = vpop.f32.mrf.mxu0 }
 0x213   : > { %v1297_v59 = vadd.f32 %v2853_v56, %v1296_v54 }
 0x215   : > { %v1366_v63 = vpack.c.bf16 %v1297_v59, %v1297_v59 }
 0x216   : > { %v1329_v55 = vpop.f32.mrf.mxu1 }
 0x217   : > { %v1330_v57 = vadd.f32 %v2854_v53, %v1329_v55 }
 0x219   : > { %v1367_v58 = vpack.c.bf16 %v1330_v57, %v1330_v57  ;;  %v1362_v9 = vpop.f32.mrf.mxu2 }
 0x21a   : > { %v1298_v61 = vpop.f32.mrf.mxu0  ;;  %v1363_v17 = vadd.f32 %v2855_v16, %v1362_v9 }
 0x21b   : > { %v1373_v60 = vsel %vm1368_vm10, %v1367_v58, 0  ;;  %v2760_v61 = vld [vmem:[%s3682_s25 + $0x20] sm:$0xff] }
 0x21c   : > { %1382 = vmatpush.bf16.xpose.msra.mxu3 %v1373_v60  ;;  %v1401_v18 = vpack.c.bf16 %v1363_v17, %v1363_v17  ;;  %v2761_v60 = vld [vmem:[%s3682_s25 + $0x28] sm:$0xff] }
 0x21e   : > { %v1331_v62 = vpop.f32.mrf.mxu1  ;;  %v1408_v19 = vsel %vm1406_vm12, %v1401_v18, 0 }
 0x21f   : > { %1417 = vmatpush.bf16.msrb.mxu0 %v1408_v19  ;;  %v2759_v62 = vld [vmem:[%s3224_s23 + $0x28] sm:$0xff] }
 0x221   : > { %v1364_v13 = vpop.f32.mrf.mxu2 }
 0x223   : > { %2561 = vmatmul.msk.bf16.vlgmr.msra.gmra.mxu3 %vm1368_vm10, %v1366_v63  ;;  %v2758_v63 = vld [vmem:[%s3224_s23 + $0x20] sm:$0xff] }
 0x224   : > { %1523 = vmatpush.bf16.msrb.mxu3 %v2757_v28  ;;  %v2861_v28 = vld [vmem:[%s3250_s12 + $0x2] ss:$0 sm:$0xff] }
 0x226   : > { %v1456_v25 = vpop.f32.mrf.mxu1 }
 0x227   : > { %v1457_v35 = vadd.f32 %v2857_v34, %v1456_v25 }
 0x228   : > { %1524 = vmatpush.bf16.msrb.mxu3 %v2756_v29 }
 0x229   : > { %v1491_v20 = vpop.f32.mrf.mxu2  ;;  %v1530_v36 = vpack.c.bf16 %v1457_v35, %v1457_v35 }
 0x22a   : > { %v1492_v22 = vadd.f32 %v2856_v21, %v1491_v20  ;;  %v2763_v21 = vld [vmem:[%s3245_s1 + $0x28] sm:$0xff] }
 0x22c   : > { %v1531_v23 = vpack.c.bf16 %v1492_v22, %v1492_v22  ;;  %1619 = vmatpush.bf16.msra.mxu3 %v1610_v38  ;;  %v2762_v22 = vld [vmem:[%s3245_s1 + $0x20] sm:$0xff] }
 0x22e   : > { %v1536_v24 = vsel %vm1368_vm10, %v1531_v23, 0  ;;  %v1458_v27 = vpop.f32.mrf.mxu1 }
 0x22f   : > { %1545 = vmatpush.bf16.xpose.msra.mxu0 %v1536_v24  ;;  %v2767_v27 = vld [vmem:[%s3682_s25 + $0x38] sm:$0xff] }
 0x231   : > { %v1493_v26 = vpop.f32.mrf.mxu2 }
 0x233   : > { %2604 = vmatmul.msk.bf16.vlgmr.msrb.gmra.mxu3 %vm1283_vm9, %v3357_v52 }
 0x2a6   : > { %v1384_v3 = vpop.f32.mrf.mxu3 }
 0x2a7   : > { %v1389_v4 = vsel %vm1388_vm11, %v1384_v3, -inf }
 0x2a8   : > { %1390 = vmax.xlane.f32.xlu0 %v1389_v4  ;;  %v2607_v4 = vld [vmem:[%s3260_s8 + $0x4] sm:$0xf] }
 0x2ae   : > { %v1386_v5 = vpop.f32.mrf.mxu3 }
 0x2af   : > { %v1591_v5 = vsel %vm1589_vm14, %v2607_v4, 0 }
 0x2b0   : > { %1600 = vmatpush.bf16.msra.mxu2 %v1591_v5 }
 0x2b4   : > { %1723 = vmatpush.bf16.msrb.mxu2 %v2763_v21 }
 0x2b6   : > { %v1526_v40 = vpop.f32.mrf.mxu3 }
 0x2b7   : > { %v1527_v42 = vadd.f32 %v2858_v39, %v1526_v40  ;;  %v2766_v39 = vld [vmem:[%s3682_s25 + $0x30] sm:$0xff]  ;;  %v2765_v40 = vld [vmem:[%s3224_s23 + $0x38] sm:$0xff] }
 0x2b8   : > { %1724 = vmatpush.bf16.msrb.mxu2 %v2762_v22 }
 0x2b9   : > { %v1563_v44 = vpack.c.bf16 %v1527_v42, %v1527_v42  ;;  %v2654_v42 = vld [vmem:[%s3260_s8 + $0x8] sm:$0xf] }
 0x2bb   : > { %v1568_v45 = vsel %vm1406_vm12, %v1563_v44, 0 }
 0x2bc   : > { %1577 = vmatpush.bf16.msra.mxu1 %v1568_v45 }
 0x2be   : > { %v1528_v46 = vpop.f32.mrf.mxu3 }
 0x2c0   : > { %1688 = vmatpush.bf16.msrb.mxu1 %v2761_v60 }
 0x2c4   : > { %1689 = vmatpush.bf16.msrb.mxu1 %v2760_v61  ;;  %v2863_v61 = vld [vmem:[%s3684_s2 + $0x3] ss:$0 sm:$0xff] }
 0x31b   : > { %v1391_v10 = vpop.xlane.xlu0 %1390 }
 0x31c   : > { %v1392_v11 = vsub.f32 %v1384_v3, %v1391_v10 }
 0x31e   : > { %v1393_v12 = vmul.f32 1.442695, %v1392_v11  ;;  %v2859_v11 = vld [vmem:[%s3683_s4 + $0x2] ss:$0 sm:$0xff] }
 0x320   : > { %2872 = vpow2.f32 %v1393_v12 }
 0x326   : > { %v2873_v14 = vpop.eup %2872 }
 0x327   : > { %v1395_v15 = vsel %vm1388_vm11, %v2873_v14, 0.0 }
 0x328   : > { %1396 = vadd.xlane.f32.xlu0 %v1395_v15 }
 0x39b   : > { %v1397_v30 = vpop.xlane.xlu0 %1396 }
 0x39c   : > { %2874 = vrcp.f32 %v1397_v30 }
 0x3a2   : > { %v2875_v31 = vpop.eup %2874 }
 0x3a3   : > { %v1399_v32 = vmul.f32 %v2875_v31, %v2873_v14  ;;  %v2860_v14 = vld [vmem:[%s3684_s2 + $0x2] ss:$0 sm:$0xff] }
 0x3a5   : > { %v1400_v33 = vpack.c.bf16 %v1399_v32, %v1399_v32 }
 0x3a7   : > { %2562 = vmatmul.msk.bf16.vlgmr.msrb.gmra.mxu0 %vm1402_vm13, %v1400_v33 }
 0x3a8   : > { %1653 = vmatpush.bf16.msrb.mxu0 %v2759_v62 }
 0x3ac   : > { %1654 = vmatpush.bf16.msrb.mxu0 %v2758_v63 }
 0x3b7   : > { %2605 = vmatmul.msk.bf16.vlgmr.msra.gmra.mxu0 %vm1368_vm10, %v1530_v36 }
 0x3c7   : > { %2623 = vmatmul.msk.bf16.vlgmr.msrb.gmra.mxu0 %vm1283_vm9, %v3357_v52 }
 0x424   : > { %v1419_v41 = vpop.f32.mrf.mxu0 }
 0x425   : > { %v1423_v43 = vpack.c.bf16 %v1419_v41, %v1419_v41  ;;  %v2764_v41 = vld [vmem:[%s3224_s23 + $0x30] sm:$0xff] }
 0x427   : > { %2609 = vmatmul.msk.bf16.vlgmr.msra.gmra.mxu3 %vm1368_vm10, %v1423_v43  ;;  %v1790_v43 = vsel %vm1589_vm14, %v2654_v42, 0 }
 0x42c   : > { %v1421_v47 = vpop.f32.mrf.mxu0 }
 0x434   : > { %v1547_v48 = vpop.f32.mrf.mxu0 }
 0x435   : > { %v1551_v49 = vsel %vm1388_vm11, %v1547_v48, -inf }
 0x436   : > { %1552 = vmax.xlane.f32.xlu1 %v1551_v49 }
 0x43c   : > { %v1549_v50 = vpop.f32.mrf.mxu0 }
 0x444   : > { %v1656_v6 = vpop.f32.mrf.mxu0 }
 0x445   : > { %v1657_v17 = vadd.f32 %v2860_v14, %v1656_v6 }
 0x447   : > { %v1730_v19 = vpack.c.bf16 %v1657_v17, %v1657_v17 }
 0x44c   : > { %v1658_v7 = vpop.f32.mrf.mxu0 }
 0x4a9   : > { %v1553_v53 = vpop.xlane.xlu1 %1552 }
 0x4aa   : > { %v1554_v54 = vsub.f32 %v1547_v48, %v1553_v53  ;;  %v3398_v55 = vpop.f32.mrf.mxu3  ;;  %v2862_v48 = vld [vmem:[%s3683_s4 + $0x3] ss:$0 sm:$0xff] }
 0x4ac   : > { %v1555_v56 = vmul.f32 1.442695, %v1554_v54 }
 0x4ae   : > { %2876 = vpow2.f32 %v1555_v56 }
 0x4b2   : > { %v1623_v57 = vpop.f32.mrf.mxu3 }
 0x4b4   : > { %v2877_v58 = vpop.eup %2876 }
 0x4b5   : > { %v1557_v59 = vsel %vm1388_vm11, %v2877_v58, 0.0 }
 0x4b6   : > { %1558 = vadd.xlane.f32.xlu1 %v1557_v59 }
 0x529   : > { %v1559_v0 = vpop.xlane.xlu1 %1558 }
 0x52a   : > { %2878 = vrcp.f32 %v1559_v0 }
 0x530   : > { %v2879_v1 = vpop.eup %2878 }
 0x531   : > { %v1561_v2 = vmul.f32 %v2879_v1, %v2877_v58  ;;  %v2769_v1 = vld [vmem:[%s3245_s1 + $0x38] sm:$0xff] }
 0x533   : > { %v1562_v3 = vpack.c.bf16 %v1561_v2, %v1561_v2  ;;  %v2768_v2 = vld [vmem:[%s3245_s1 + $0x30] sm:$0xff]  ;;  %s3685_s1 = scalar_lea.vmem %s3580_s17, %s3204_s6 }
 0x535   : > { %2606 = vmatmul.msk.bf16.vlgmr.msra.gmra.mxu1 %vm1402_vm13, %v1562_v3 }
 0x536   : > { %1799 = vmatpush.bf16.msra.mxu1 %v1790_v43 }
 0x545   : > { %2637 = vmatmul.msk.bf16.vlgmr.msrb.gmra.mxu1 %vm1283_vm9, %v3357_v52 }
 0x5b2   : > { %v1579_v8 = vpop.f32.mrf.mxu1 }
 0x5b3   : > { %v1583_v9 = vpack.c.bf16 %v1579_v8, %v1579_v8 }
 0x5b5   : > { %2608 = vmatmul.msk.bf16.vlgmr.msra.gmra.mxu2 %vm1368_vm10, %v1583_v9 }
 0x5b6   : > { %1834 = vmatpush.bf16.msra.mxu2 %v2765_v40 }
 0x5ba   : > { %v1581_v10 = vpop.f32.mrf.mxu1  ;;  %1835 = vmatpush.bf16.msra.mxu2 %v2764_v41 }
 0x5bb   : > { %v2864_v10 = vld [vmem:[%s3250_s12 + $0x3] ss:$0 sm:$0xff] }
 0x5c2   : > { %v1691_v12 = vpop.f32.mrf.mxu1 }
 0x5c3   : > { %v1692_v13 = vadd.f32 %v2859_v11, %v1691_v12 }
 0x5c5   : > { %v1731_v15 = vpack.c.bf16 %v1692_v13, %v1692_v13  ;;  %2651 = vmatmul.msk.bf16.vlgmr.msrb.gmra.mxu2 %vm1283_vm9, %v3357_v52 }
 0x5c7   : > { %v1736_v16 = vsel %vm1368_vm10, %v1731_v15, 0 }
 0x5c8   : > { %1745 = vmatpush.bf16.xpose.msrb.mxu3 %v1736_v16 }
 0x5ca   : > { %v1693_v18 = vpop.f32.mrf.mxu1 }
 0x5cf   : > { %2652 = vmatmul.msk.bf16.vlgmr.msrb.gmra.mxu3 %vm1368_vm10, %v1730_v19  ;;  %v2700_v19 = vld [vmem:[%s3260_s8 + $0xc] sm:$0xf] }
 0x5d0   : > { %1869 = vmatpush.bf16.msra.mxu3 %v2767_v27 }
 0x5d4   : > { %1870 = vmatpush.bf16.msra.mxu3 %v2766_v39 }
 0x5d5   : > { %2669 = vmatmul.msk.bf16.vlgmr.msra.gmra.mxu2 %vm1283_vm9, %v3357_v52 }
 0x5df   : > { %2683 = vmatmul.msk.bf16.vlgmr.msra.gmra.mxu3 %vm1283_vm9, %v3357_v52 }
 0x638   : > { %v3417_v20 = vpop.f32.mrf.mxu2 }
 0x639   : > { %v1622_v3 = vadd.f32 %v3398_v55, %v3417_v20  ;;  %v1971_v20 = vsel %vm1589_vm14, %v2700_v19, 0 }
 0x63a   : > { %1980 = vmatpush.bf16.msrb.mxu3 %v1971_v20 }
 0x640   : > { %v1604_v23 = vpop.f32.mrf.mxu2 }
 0x648   : > { %v1726_v29 = vpop.f32.mrf.mxu2 }
 0x649   : > { %v1727_v31 = vadd.f32 %v2861_v28, %v1726_v29  ;;  %v2865_v28 = vld [vmem:[%s3685_s1] ss:$0 sm:$0xff]  ;;  %s3694_s1 = sld [smem:[#allocation8_spill]] }
 0x64b   : > { %v1763_v33 = vpack.c.bf16 %v1727_v31, %v1727_v31 }
 0x64d   : > { %v1768_v35 = vsel %vm1406_vm12, %v1763_v33, 0 }
 0x64e   : > { %1777 = vmatpush.bf16.msra.mxu0 %v1768_v35  ;;  %v2992_v35 = vmov 32.0  }
 0x64f   : > { %p2729_p1 = scmp.ne.s32.totalorder %s3694_s1, 1 }
 0x650   : > { %v1728_v36 = vpop.f32.mrf.mxu2 }
 0x652   : > { %v1747_v24 = vpop.f32.mrf.mxu3  ;;  %1904 = vmatpush.bf16.msrb.mxu0 %v2769_v1 }
 0x653   : > { %v1751_v25 = vsel %vm1388_vm11, %v1747_v24, -inf }
 0x654   : > { %1752 = vmax.xlane.f32.xlu2 %v1751_v25 }
 0x656   : > { %1905 = vmatpush.bf16.msrb.mxu0 %v2768_v2 }
 0x658   : > { %v1837_v57 = vpop.f32.mrf.mxu2 }
 0x659   : > { %v1838_v63 = vadd.f32 %v2863_v61, %v1837_v57 }
 0x65a   : > { %v1749_v26 = vpop.f32.mrf.mxu3 }
 0x65b   : > { %v1911_v0 = vpack.c.bf16 %v1838_v63, %v1838_v63 }
 0x660   : > { %v1839_v58 = vpop.f32.mrf.mxu2 }
 0x662   : > { %v1872_v49 = vpop.f32.mrf.mxu3 }
 0x663   : > { %v1873_v50 = vadd.f32 %v2862_v48, %v1872_v49 }
 0x665   : > { %v1912_v53 = vpack.c.bf16 %v1873_v50, %v1873_v50 }
 0x667   : > { %v1917_v54 = vsel %vm1368_vm10, %v1912_v53, 0 }
 0x668   : > { %1926 = vmatpush.bf16.xpose.msrb.mxu1 %v1917_v54 }
 0x66a   : > { %v1874_v56 = vpop.f32.mrf.mxu3 }
 0x6c7   : > { %v1753_v30 = vpop.xlane.xlu2 %1752 }
 0x6c8   : > { %v1754_v32 = vsub.f32 %v1747_v24, %v1753_v30 }
 0x6ca   : > { %v1755_v34 = vmul.f32 1.442695, %v1754_v32 }
 0x6cc   : > { %2880 = vpow2.f32 %v1755_v34 }
 0x6d2   : > { %v2881_v37 = vpop.eup %2880 }
 0x6d3   : > { %v1757_v38 = vsel %vm1388_vm11, %v2881_v37, 0.0 }
 0x6d4   : > { %1758 = vadd.xlane.f32.xlu2 %v1757_v38 }
 0x747   : > { %v1759_v44 = vpop.xlane.xlu2 %1758 }
 0x748   : > { %2882 = vrcp.f32 %v1759_v44 }
 0x74e   : > { %v2883_v45 = vpop.eup %2882 }
 0x74f   : > { %v1761_v46 = vmul.f32 %v2883_v45, %v2881_v37 }
 0x751   : > { %v1762_v47 = vpack.c.bf16 %v1761_v46, %v1761_v46  ;;  %v2771_v46 = vld [vmem:[%s3273_s14 + $0x8] sm:$0xff] }
 0x753   : > { %2653 = vmatmul.msk.bf16.vlgmr.msra.gmra.mxu0 %vm1402_vm13, %v1762_v47  ;;  %v2770_v47 = vld [vmem:[%s3273_s14] sm:$0xff]  ;;  %s3687_s14 = scalar_lea.vmem %s3686_s7, %s3204_s6 }
 0x754   : > { %2063 = vmatpush.bf16.msra.mxu0 %v2771_v46 }
 0x758   : > { %2064 = vmatpush.bf16.msra.mxu0 %v2770_v47 }
 0x763   : > { %2697 = vmatmul.msk.bf16.vlgmr.msrb.gmra.mxu0 %vm1283_vm9, %v3357_v52 }
 0x7d0   : > { %v1779_v59 = vpop.f32.mrf.mxu0 }
 0x7d1   : > { %v1783_v60 = vpack.c.bf16 %v1779_v59, %v1779_v59 }
 0x7d3   : > { %2655 = vmatmul.msk.bf16.vlgmr.msra.gmra.mxu1 %vm1368_vm10, %v1783_v60  ;;  %v2866_v60 = vld [vmem:[%s3687_s14] ss:$0 sm:$0xff] }
 0x7d8   : > { %v1781_v62 = vpop.f32.mrf.mxu0 }
 0x7d9   : > { %v2867_v62 = vld [vmem:[%s3689_s19] ss:$0 sm:$0xff] }
 0x7e0   : > { %v1907_v11 = vpop.f32.mrf.mxu0 }
 0x7e1   : > { %v1908_v12 = vadd.f32 %v2864_v10, %v1907_v11  ;;  %v2775_v10 = vld [vmem:[%s3283_s16 + $0x18] sm:$0xff] }
 0x7e2   : > { %2159 = vmatpush.bf16.msra.mxu1 %v2775_v10 }
 0x7e3   : > { %2698 = vmatmul.msk.bf16.vlgmr.msrb.gmra.mxu1 %vm1368_vm10, %v1911_v0  ;;  %v1944_v13 = vpack.c.bf16 %v1908_v12, %v1908_v12 }
 0x7e5   : > { %v1949_v14 = vsel %vm1406_vm12, %v1944_v13, 0 }
 0x7e6   : > { %1958 = vmatpush.bf16.msrb.mxu2 %v1949_v14 }
 0x7e8   : > { %v1909_v16 = vpop.f32.mrf.mxu0 }
 0x850   : > { %v1801_v4 = vpop.f32.mrf.mxu1 }
 0x851   : > { %v1805_v5 = vadd.f32 %v1801_v4, %v1622_v3  ;;  %v2868_v3 = vld [vmem:[%s3690_s26] ss:$0 sm:$0xff] }
 0x858   : > { %v1803_v6 = vpop.f32.mrf.mxu1 }
 0x860   : > { %v1928_v7 = vpop.f32.mrf.mxu1 }
 0x861   : > { %v1932_v8 = vsel %vm1388_vm11, %v1928_v7, -inf }
 0x862   : > { %1933 = vmax.xlane.f32.xlu0 %v1932_v8 }
 0x868   : > { %v1930_v9 = vpop.f32.mrf.mxu1 }
 0x8d5   : > { %v1934_v55 = vpop.xlane.xlu0 %1933 }
 0x8d6   : > { %v1935_v15 = vsub.f32 %v1928_v7, %v1934_v55  ;;  %v2774_v55 = vld [vmem:[%s3283_s16 + $0x10] sm:$0xff] }
 0x8d7   : > { %2160 = vmatpush.bf16.msra.mxu1 %v2774_v55 }
 0x8d8   : > { %v1936_v17 = vmul.f32 1.442695, %v1935_v15 }
 0x8da   : > { %2884 = vpow2.f32 %v1936_v17 }
 0x8e0   : > { %v2885_v52 = vpop.eup %2884 }
 0x8e1   : > { %v1938_v18 = vsel %vm1388_vm11, %v2885_v52, 0.0 }
 0x8e2   : > { %1939 = vadd.xlane.f32.xlu1 %v1938_v18  ;;  %v2773_v18 = vld [vmem:[%s3283_s16 + $0x8] sm:$0xff] }
 0x8e3   : > { %2161 = vmatpush.bf16.msra.mxu1 %v2773_v18 }
 0x955   : > { %v1940_v21 = vpop.xlane.xlu1 %1939 }
 0x956   : > { %2886 = vrcp.f32 %v1940_v21 }
 0x957   : > { %2888 = vrcp.f32 %v2992_v35 }
 0x95c   : > { %v2887_v22 = vpop.eup %2886 }
 0x95d   : > { %v1942_v23 = vmul.f32 %v2887_v22, %v2885_v52  ;;  %v2889_v36 = vpop.eup %2888  ;;  %v2772_v22 = vld [vmem:[%s3283_s16] sm:$0xff] }
 0x95e   : > { %v2000_v37 = vmul.f32 32.0, %v2889_v36  ;;  %vm2004_vm0 = vweird.f32 %v2889_v36  ;;  %2162 = vmatpush.bf16.msra.mxu1 %v2772_v22 }
 0x95f   : > { %v1943_v24 = vpack.c.bf16 %v1942_v23, %v1942_v23 }
 0x960   : > { %v2001_v38 = vsub.f32 1.0, %v2000_v37 }
 0x961   : > { %2699 = vmatmul.msk.bf16.vlgmr.msrb.gmra.mxu2 %vm1402_vm13, %v1943_v24 }
 0x962   : > { %v2002_v39 = vmul.f32 %v2889_v36, %v2001_v38 }
 0x964   : > { %v2003_v40 = vadd.f32 %v2889_v36, %v2002_v39 }
 0x966   : > { %v3464_v41 = vsel %vm2004_vm0, %v2889_v36, %v2003_v40 }
 0x9e4   : > { %v1960_v25 = vpop.f32.mrf.mxu2 }
 0x9e5   : > { %v1964_v26 = vpack.c.bf16 %v1960_v25, %v1960_v25 }
 0x9e7   : > { %2701 = vmatmul.msk.bf16.vlgmr.msrb.gmra.mxu3 %vm1368_vm10, %v1964_v26 }
 0x9ec   : > { %v1962_v27 = vpop.f32.mrf.mxu2 }
 0xa6a   : > { %v1982_v29 = vpop.f32.mrf.mxu3 }
 0xa6b   : > { %v1986_v30 = vadd.f32 %v1982_v29, %v1805_v5 }
 0xa6d   : > { %v1991_v31 = vadd.f32 %v2865_v28, %v1986_v30 }
 0xa6f   : > { %v1992_v32 = vadd.f32 %v1991_v31, %v3353_v51 }
 0xa71   : > { %v1996_v33 = vsel %vm1995_vm15, %v1992_v32, 0.0 }
 0xa72   : > { %1997 = vadd.xlane.f32.xlu2 %v1996_v33  ;;  %v1984_v34 = vpop.f32.mrf.mxu3 }
 0xae5   : > { %v1998_v42 = vpop.xlane.xlu2 %1997 }
 0xae6   : > { %v2006_v43 = vmul.f32 %v3464_v41, %v1998_v42 }
 0xae8   : > { %v2007_v51 = vsub.f32 %v1992_v32, %v2006_v43 }
 0xaea   : > { %v2008_v44 = vmul.f32 %v2007_v51, %v2007_v51 }
 0xaec   : > { %v2009_v45 = vsel %vm1995_vm15, %v2008_v44, 0.0 }
 0xaed   : > { %2010 = vadd.xlane.f32.xlu0 %v2009_v45 }
 0xb60   : > { %v2011_v48 = vpop.xlane.xlu0 %2010 }
 0xb61   : > { %v2012_v49 = vmul.f32 %v2011_v48, %v3464_v41 }
 0xb63   : > { %v2013_v50 = vadd.f32 1e-05, %v2012_v49  ;;  %v2869_v49 = vld [vmem:[%s1088_s0] ss:$0 sm:$0xff] }
 0xb65   : > { %2890 = vrsqrt.f32 %v2013_v50  ;;  %vm2020_vm2 = vweird.f32 %v2013_v50 }
 0xb6b   : > { %v2891_v53 = vpop.eup %2890 }
 0xb6c   : > { %v2015_v54 = vmul.f32 %v2891_v53, %v2013_v50  ;;  %vm2021_vm1 = vweird.f32 %v2891_v53 }
 0xb6d   : > { %vm2022_vm3 = vmor %vm2020_vm2, %vm2021_vm1 }
 0xb6e   : > { %v2016_v56 = vmul.f32 %v2891_v53, %v2015_v54 }
 0xb70   : > { %v2017_v57 = vmul.f32 0.5, %v2016_v56 }
 0xb72   : > { %v2018_v58 = vsub.f32 1.5, %v2017_v57 }
 0xb74   : > { %v2019_v59 = vmul.f32 %v2891_v53, %v2018_v58 }
 0xb76   : > { %v2023_v61 = vsel %vm2022_vm3, %v2891_v53, %v2019_v59 }
 0xb77   : > { %v2024_v63 = vmul.f32 %v2023_v61, %v2007_v51 }
 0xb79   : > { %v2028_v0 = vmul.f32 %v2866_v60, %v2024_v63 }
 0xb7b   : > { %v3481_v1 = vadd.f32 %v2867_v62, %v2028_v0 }
 0xb7d   : > { %v2033_v2 = vpack.c.bf16 %v3481_v1, %v3481_v1 }
 0xb7f   : > { %2710 = vmatmul.msk.bf16.vlgmr.msra.gmra.mxu0 %vm1283_vm9, %v2033_v2 }
 0xbfc   : > { %v2066_v4 = vpop.f32.mrf.mxu0 }
 0xbfd   : > { %v2067_v5 = vadd.f32 %v2868_v3, %v2066_v4 }
 0xbff   : > { %v2071_v6 = vmul.f32 0.70710677, %v2067_v5  ;;  %v2070_v45 = vmul.f32 0.5, %v2067_v5 }
 0xc01   : > { %v2072_v7 = vmul.f32 %v2071_v6, %v2071_v6 }
 0xc03   : > { %v2073_v8 = vmin.f32 %v2072_v7, 16.0 }
 0xc04   : > { %v2068_v9 = vpop.f32.mrf.mxu0 }
 0xc05   : > { %v2074_v11 = vmul.f32 2.1237322e-06, %v2073_v8  ;;  %v2085_v12 = vmul.f32 3.8918573e-05, %v2073_v8 }
 0xc07   : > { %v2075_v13 = vadd.f32 0.00028619796, %v2074_v11  ;;  %v2086_v14 = vadd.f32 0.001143296, %v2085_v12 }
 0xc09   : > { %v2076_v15 = vmul.f32 %v2075_v13, %v2073_v8  ;;  %v2087_v16 = vmul.f32 %v2086_v14, %v2073_v8 }
 0xc0b   : > { %v2088_v17 = vadd.f32 0.014752088, %v2087_v16  ;;  %v2077_v52 = vadd.f32 0.0036580483, %v2076_v15 }
 0xc0d   : > { %v2089_v19 = vmul.f32 %v2088_v17, %v2073_v8  ;;  %v2078_v21 = vmul.f32 %v2077_v52, %v2073_v8 }
 0xc0f   : > { %v2090_v20 = vadd.f32 0.112945676, %v2089_v19  ;;  %v2079_v25 = vadd.f32 0.05243302, %v2078_v21 }
 0xc11   : > { %v2091_v23 = vmul.f32 %v2090_v20, %v2073_v8  ;;  %v2080_v28 = vmul.f32 %v2079_v25, %v2073_v8 }
 0xc13   : > { %v2092_v24 = vadd.f32 0.4994258, %v2091_v23  ;;  %v2081_v29 = vadd.f32 0.18741608, %v2080_v28 }
 0xc15   : > { %v2093_v26 = vmul.f32 %v2092_v24, %v2073_v8  ;;  %v2082_v31 = vmul.f32 %v2081_v29, %v2073_v8  ;;  %v2870_v8 = vld [vmem:[%s1091_s9] ss:$0 sm:$0xff] }
 0xc17   : > { %v2094_v27 = vadd.f32 1.0, %v2093_v26  ;;  %v2083_v35 = vadd.f32 1.1283791, %v2082_v31 }
 0xc19   : > { %2892 = vrcp.f32 %v2094_v27  ;;  %v2106_v34 = vand.u32 2147483648, %v2094_v27  ;;  %v2104_v37 = vand.u32 2147483647, %v2094_v27  ;;  %vm2100_vm5 = vweird.f32 %v2094_v27 }
 0xc1a   : > { %v2084_v40 = vmul.f32 %v2083_v35, %v2071_v6 }
 0xc1b   : > { %v2107_v39 = vor.u32 1.1754944e-38, %v2106_v34  ;;  %vm2105_vm7 = vcmp.eq.f32.partialorder %v2104_v37, 8.507059e+37 }
 0xc1f   : > { %v2893_v30 = vpop.eup %2892 }
 0xc20   : > { %v2096_v32 = vmul.f32 %v2893_v30, %v2094_v27  ;;  %vm2101_vm4 = vweird.f32 %v2893_v30 }
 0xc21   : > { %vm2102_vm6 = vmor %vm2100_vm5, %vm2101_vm4 }
 0xc22   : > { %v2097_v33 = vsub.f32 1.0, %v2096_v32 }
 0xc24   : > { %v2098_v36 = vmul.f32 %v2893_v30, %v2097_v33 }
 0xc26   : > { %v2099_v38 = vadd.f32 %v2893_v30, %v2098_v36 }
 0xc28   : > { %v2103_v42 = vsel %vm2102_vm6, %v2893_v30, %v2099_v38 }
 0xc29   : > { %v2108_v43 = vsel %vm2105_vm7, %v2107_v39, %v2103_v42 }
 0xc2a   : > { %v2109_v51 = vmul.f32 %v2108_v43, %v2084_v40 }
 0xc2c   : > { %v2711_v44 = vclamps-f32 %v2109_v51, 1.0 }
 0xc2e   : > { %v2112_v46 = vadd.f32 1.0, %v2711_v44 }
 0xc30   : > { %v2113_v47 = vmul.f32 %v2112_v46, %v2070_v45 }
 0xc32   : > { %v2114_v48 = vpack.c.bf16 %v2113_v47, %v2113_v47 }
 0xc34   : > { %2728 = vmatmul.msk.bf16.vlgmr.msra.gmra.mxu1 %vm2151_vm8, %v2114_v48 }
 0xcb1   : > { %v2164_v50 = vpop.f32.mrf.mxu1 }
 0xcb2   : > { %v2165_v53 = vadd.f32 %v2869_v49, %v2164_v50 }
 0xcb4   : > { %v2168_v54 = vadd.f32 %v2165_v53, %v3481_v1 }
 0xcb6   : > { %v2171_v56 = vsel %vm1995_vm15, %v2168_v54, 0.0 }
 0xcb7   : > { %2172 = vadd.xlane.f32.xlu1 %v2171_v56 }
 0xcb9   : > { %v2166_v57 = vpop.f32.mrf.mxu1 }
 0xd2a   : > { %v2173_v58 = vpop.xlane.xlu1 %2172 }
 0xd2b   : > { %v2174_v59 = vmul.f32 %v2173_v58, %v3464_v41 }
 0xd2d   : > { %v2175_v60 = vsub.f32 %v2168_v54, %v2174_v59 }
 0xd2f   : > { %v2176_v61 = vmul.f32 %v2175_v60, %v2175_v60 }
 0xd31   : > { %v2177_v62 = vsel %vm1995_vm15, %v2176_v61, 0.0 }
 0xd32   : > { %2178 = vadd.xlane.f32.xlu2 %v2177_v62 }
 0xda5   : > { %v2179_v63 = vpop.xlane.xlu2 %2178 }
 0xda6   : > { %v2180_v0 = vmul.f32 %v2179_v63, %v3464_v41  ;;  %v2871_v41 = vld [vmem:[%s1094_s18] ss:$0 sm:$0xff] }
 0xda8   : > { %v2181_v2 = vadd.f32 1e-05, %v2180_v0 }
 0xdaa   : > { %2894 = vrsqrt.f32 %v2181_v2  ;;  %vm2188_vm10 = vweird.f32 %v2181_v2 }
 0xdb0   : > { %v2895_v1 = vpop.eup %2894 }
 0xdb1   : > { %v2183_v3 = vmul.f32 %v2895_v1, %v2181_v2  ;;  %vm2189_vm9 = vweird.f32 %v2895_v1 }
 0xdb2   : > { %vm2190_vm11 = vmor %vm2188_vm10, %vm2189_vm9 }
 0xdb3   : > { %v2184_v4 = vmul.f32 %v2895_v1, %v2183_v3 }
 0xdb5   : > { %v2185_v5 = vmul.f32 0.5, %v2184_v4 }
 0xdb7   : > { %v2186_v6 = vsub.f32 1.5, %v2185_v5 }
 0xdb9   : > { %v2187_v7 = vmul.f32 %v2895_v1, %v2186_v6 }
 0xdbb   : > { %v2191_v9 = vsel %vm2190_vm11, %v2895_v1, %v2187_v7 }
 0xdbc   : > { %v2192_v10 = vmul.f32 %v2191_v9, %v2175_v60 }
 0xdbe   : > { %v2196_v11 = vmul.f32 %v2870_v8, %v2192_v10  ;;  %2205 = sbr.rel (%p2729_p1) target bundleno = 3525 (0xdc5), region = 132 }
 0xdc0   : > { %v2200_v12 = vadd.f32 %v2871_v41, %v2196_v11 }
 0xdc2   : > { %2201 = vst.msk [vmem:[#allocation2] sm:$0x3f] %vm1995_vm15, %v2200_v12 }
 0xdc3   : > { %vm2206_vm12 = vcmask 253952  }
 0xdc4   : > { %2207 = vst.msk [vmem:[%s3299_s30] sm:$0x1] %vm2206_vm12, %v2200_v12 }
 0xdc5 PF: > { %s3695_s9 = sld [smem:[#allocation9_spill]]  ;;  %s2219_s28 = sshll.u32 %s3299_s30, 4  ;;  %s2220_s28 = int_to_ptr.vmem [resolvable:$true] %s2219_s28 }
 0xdc6   : > { %s3696_s7 = sld [smem:[#allocation45_spill]]  ;;  %s3699_s29 = sand.u32 1, %s2966_s3  }
 0xdc7   : > { %s2209_s19 = scalar_lea.sflag [#allocation4], %s3699_s29 }
 0xdcc   : > { %s3697_s14 = smov %s3696_s7  ;;  %s2217_s18 = scalar_lea.hbm %s3696_s7, %s3695_s9 }
 0xdcd   : > { %s2221_s10 = sshll.u32 %s2217_s18, 4  ;;  %s2916_s5 = scalar_lea.hbm %s3697_s14, 2  ;;  %s2222_s10 = int_to_ptr.hbm [resolvable:$true] %s2221_s10 }
 0xdce   : > { %s2910_s13 = sshra.s32 %s2222_s10, 4  ;;  %s2911_s13 = int_to_ptr.hbm [resolvable:$true] %s2910_s13 }
 0xdcf   : > { %s2912_s24 = scalar_lea.hbm %s2911_s13, 1  ;;  %p2917_p6 = scmp.lt.s32.totalorder %s2911_s13, %s3697_s14 }
 0xdd0   : > { %p2913_p2 = scmp.ne.s32.totalorder %s2911_s13, %s2912_s24  ;;  %p2918_p7 = scmp.lt.s32.totalorder %s2916_s5, %s2912_s24 }
 0xdd2   : > { %p2914_p4 = pnand %p2913_p2, %p3177_p3  ;;  %p2919_p8 = por %p2918_p7, %p2917_p6 }
 0xdd4   : > { %p2915_p5 = pneg %p2914_p4 }
 0xdd6   : > { %p2920_p10 = pnand %p2919_p8, %p2915_p5 }
 0xdd8   : > { %2923 = shalt.err (!%p2920_p10)
}
 0xdd9   : > { %2776 = dma.vmem_to_hbm [thread:$0]  (%p3177_p3), %s2220_s28, 16, %s2222_s10, %s2209_s19  }
 0xdda PF: > { %s3700_s30 = sld [smem:[#allocation12_spill]] }
 0xddb   : > { %s3701_s25 = sld [smem:[#allocation6_spill]] }
 0xde0   : > { %p2782_p11 = scmp.ge.s32.totalorder %s3700_s30, 2 }
 0xde1   : > { %s2233_s2 = sand.u32 1, %s3701_s25  }
 0xde2   : > { %p2779_p12 = pnand %p2782_p11, %p3187_p9  ;;  %s2234_s12 = scalar_lea.sflag [#allocation4], %s2233_s2 }
 0xde4   : > { %p2780_p13 = pneg %p2779_p12 }
 0xde6   : > { %2957 = dma.done.wait (%p2780_p13), %s2234_s12, 16  }
 0xde7   : > { %2959 = vsyncadd (%p2780_p13), %s2234_s12, 4294967280  ;;  %s39_s0 = sadd.s32 1, %s3700_s30   ;;  %s3703_s23 = sld [smem:[#allocation7_spill]] }
 0xde8   : > { %p36_p0 = scmp.ge.s32.totalorder %s39_s0, 6   ;;  %s3704_s7 = sld [smem:[#allocation17_spill]] }
 0xde9   : > { %s3705_s28 = sld [smem:[#allocation10_spill]]  ;;  %s3709_s27 = smov %s2966_s3 }
 0xdea   : > { %s3706_s8 = sld [smem:[#allocation11_spill]]  ;;  %38 = sbr.rel (!%p36_p0) target bundleno = 31 (0x1f), region = 242 }
 0xdeb   : > { %s3707_s4 = sld [smem:[#allocation13_spill]] }
 0xdec   : > { %s3708_s29 = sld [smem:[#allocation15_spill]] }
 0xded   : > { %s3710_s3 = smov %s3703_s23 }
 0xdef   :  { %2239 = vsyncpa [#allocation4], 1 }
 0xdf0   :  { %2241 = vsyncpa [#allocation4 + $0x1], 1 }

</bundles_post_ra>
